<compile_context>
chip_gen: v5e
topology: v5e:2x2
jax: 0.10.0
libtpu: 0.0.40
codegen_flags: <defaults>
</compile_context>

<pallas_src>
import functools

import jax
import jax.numpy as jnp
from jax import lax
from jax.experimental import pallas as pl
from jax.experimental.pallas import tpu as pltpu


def _dynconv_edge_kernel(xq_ref, xct_ref, sqc_ref, base_ref, xw2_ref, o_ref, *, n, k, tm):
    blk = pl.program_id(0)

    xq = xq_ref[...].astype(jnp.float32)      # (TM, C)     query rows of this grid step
    xct = xct_ref[...].astype(jnp.float32)    # (C,  N)     candidate features, pre-transposed
    sq_c = sqc_ref[...].astype(jnp.float32)   # (1,  N)     ||x_j||^2 (precomputed)
    base = base_ref[...].astype(jnp.float32)  # (TM, Coutp) x_i @ (W1-W2) + b (precomputed)
    xw2 = xw2_ref[...].astype(jnp.float32)    # (N,  Coutp) x_j @ W2 (pre-projected, gathered below)

    # ---- pairwise squared Euclidean distances for this row block (MXU + cheap row norms) ----
    sq_q = jnp.sum(xq * xq, axis=-1, keepdims=True)                 # (TM, 1)  ||x_i||^2
    gram = jnp.dot(xq, xct, preferred_element_type=jnp.float32)     # (TM, N)
    dist = sq_q + sq_c - 2.0 * gram                                 # (TM, N)

    big = jnp.float32(1e30)
    col0 = lax.broadcasted_iota(jnp.int32, (tm, n), 1)
    row = lax.broadcasted_iota(jnp.int32, (tm, n), 0) + blk * tm
    dist = jnp.where(row == col0, big, dist)                        # exclude self loops

    acc0 = jnp.full(o_ref.shape, jnp.float32(-1e30), dtype=jnp.float32)

    def body(_, carry):
        d, acc = carry
        # re-materialize the column iota (cheap VPU op) instead of keeping it live across iters
        col = lax.broadcasted_iota(jnp.int32, (tm, n), 1)
        # exact masked argmin, lowest-index tie break (matches stable argsort top-k)
        rmin = jnp.min(d, axis=-1, keepdims=True)                            # (TM, 1)
        jsel = jnp.min(jnp.where(d <= rmin, col, n), axis=-1, keepdims=True)
        onehot = (col == jsel).astype(jnp.float32)                           # (TM, N)
        # gather the pre-projected (lane-dense) x_j @ W2 rows via one one-hot matmul
        gath = jnp.dot(onehot, xw2, preferred_element_type=jnp.float32)      # (TM, Coutp)
        acc = jnp.maximum(acc, jnp.maximum(base + gath, 0.0))                # ReLU + max aggr
        d = d + onehot * big                                                 # consume neighbor (FMA)
        return d, acc

    _, acc = lax.fori_loop(0, k, body, (dist, acc0))
    o_ref[...] = acc.astype(o_ref.dtype)


def dyn_conv_edge(x, w, b, *, k=9, block_rows=128):
    """x: (N, C) f32, w: (2C, Cout) f32 (nn.Linear.weight.T), b: (Cout,) f32."""
    n, c = x.shape
    two_c, cout = w.shape
    assert two_c == 2 * c
    assert 0 < k < n, "need k < num_nodes (no self loops)"

    # Pre-fold the Linear weight (once per call, outside the kernel).
    w1, w2 = w[:c], w[c:]
    w12 = w1 - w2

    # Pad Cout to a lane-dense multiple of 128 (padded channels -> ReLU(0)=0, sliced off below).
    coutp = ((cout + 127) // 128) * 128
    pad = coutp - cout
    if pad:
        w12p = jnp.pad(w12, ((0, 0), (0, pad)))
        w2p = jnp.pad(w2, ((0, 0), (0, pad)))
        bp = jnp.pad(b, (0, pad))
    else:
        w12p, w2p, bp = w12, w2, b
    bp = bp.reshape(1, coutp)

    hi = lax.Precision.HIGHEST
    # Grid-invariant precompute hoisted out of the kernel (cheap XLA ops, done once per call).
    xw2 = jnp.dot(x, w2p, precision=hi)                    # (N, Coutp)  pre-projected neighbors
    base = jnp.dot(x, w12p, precision=hi) + bp             # (N, Coutp)  x_i@(W1-W2) + b
    xct = x.T                                              # (C, N)
    sq_c = jnp.sum(x * x, axis=-1, keepdims=True).T        # (1, N)

    # Row-block size: largest multiple of 8 <= block_rows that divides N.
    tm = min(block_rows, n)
    tm = (tm // 8) * 8
    while tm > 8 and n % tm != 0:
        tm -= 8
    assert tm >= 8 and n % tm == 0 and tm % 8 == 0, "could not pick a valid row block"
    grid = (n // tm,)

    kernel = functools.partial(_dynconv_edge_kernel, n=n, k=k, tm=tm)

    # Advisory cost estimate (gram + k one-hot gathers per row).
    flops = 2 * n * n * c + k * 2 * n * n * coutp
    bytes_accessed = 4 * (2 * n * c + n + 3 * n * coutp)

    # VMEM budget from real block sizes (double-buffered) + in-kernel live-set headroom,
    # clamped to <= 48 MiB so it stays safe on v7x's 64 MiB per-TC VMEM.
    block_bytes = 4 * (tm * c + c * n + n + tm * coutp + n * coutp + tm * coutp)
    live_bytes = 4 * 4 * tm * n                     # dist / onehot / iota / spill headroom
    vmem_limit = int(min(48 * 1024 * 1024,
                         max(32 * 1024 * 1024, 4 * (2 * block_bytes + live_bytes))))

    out = pl.pallas_call(
        kernel,
        out_shape=jax.ShapeDtypeStruct((n, coutp), jnp.float32),
        grid_spec=pltpu.PrefetchScalarGridSpec(
            num_scalar_prefetch=0,
            grid=grid,
            in_specs=[
                pl.BlockSpec((tm, c), lambda i: (i, 0)),       # query rows       (streamed)
                pl.BlockSpec((c, n), lambda i: (0, 0)),        # x^T              (resident)
                pl.BlockSpec((1, n), lambda i: (0, 0)),        # ||x_j||^2        (resident)
                pl.BlockSpec((tm, coutp), lambda i: (i, 0)),   # base rows        (streamed)
                pl.BlockSpec((n, coutp), lambda i: (0, 0)),    # x @ W2           (resident)
            ],
            out_specs=pl.BlockSpec((tm, coutp), lambda i: (i, 0)),
        ),
        compiler_params=pltpu.CompilerParams(
            dimension_semantics=("parallel",),
            vmem_limit_bytes=vmem_limit,
        ),
        cost_estimate=pl.CostEstimate(
            flops=flops, transcendentals=0, bytes_accessed=bytes_accessed),
    )(x, xct, sq_c, base, xw2)

    return out[:, :cout]


def _reference(x, w, b, k):
    """Pure-JAX reference of DynConv(edge) forward."""
    n = x.shape[0]
    sq = jnp.sum(x * x, axis=-1, keepdims=True)
    d = sq + sq.T - 2.0 * jnp.dot(x, x.T, precision=lax.Precision.HIGHEST)
    d = jnp.where(jnp.eye(n, dtype=bool), jnp.inf, d)
    idx = jnp.argsort(d, axis=-1)[:, :k]                            # (N, k) kNN indices
    xi = jnp.broadcast_to(x[:, None, :], (n, k, x.shape[1]))
    xj = x[idx]
    feat = jnp.concatenate([xi, xj - xi], axis=-1)                  # (N, k, 2C)
    msg = jnp.einsum("nkc,co->nko", feat, w,
                     precision=lax.Precision.HIGHEST) + b
    msg = jnp.maximum(msg, 0.0)
    return jnp.max(msg, axis=1)


if __name__ == "__main__":
    N, C, COUT, K = 256, 16, 32, 9

    key = jax.random.PRNGKey(0)
    kx, kw, kb = jax.random.split(key, 3)
    x = jax.random.normal(kx, (N, C), dtype=jnp.float32)

    # Deterministic glorot-uniform init of the MLP([2C, COUT]) Linear layer.
    limit = (6.0 / (2 * C + COUT)) ** 0.5
    w = jax.random.uniform(kw, (2 * C, COUT), jnp.float32, -limit, limit)
    b = jax.random.uniform(kb, (COUT,), jnp.float32, -0.1, 0.1)

    out = dyn_conv_edge(x, w, b, k=K, block_rows=128)
    out = jax.block_until_ready(out)

    ref = _reference(x, w, b, K)
    assert out.shape == (N, COUT)
    assert jnp.allclose(out, ref, atol=2e-3, rtol=2e-3), "mismatch vs pure-JAX reference"

    print("KERNEL_OK")
</pallas_src>

<mosaic_0001>
module attributes {stable_mosaic.version = 11 : i64} {
  func.func @_dynconv_edge_kernel(%arg0: i32, %arg1: memref<128x16xf32, #tpu.memory_space<vmem>>, %arg2: memref<16x256xf32, #tpu.memory_space<vmem>>, %arg3: memref<1x256xf32, #tpu.memory_space<vmem>>, %arg4: memref<128x128xf32, #tpu.memory_space<vmem>>, %arg5: memref<256x128xf32, #tpu.memory_space<vmem>>, %arg6: memref<128x128xf32, #tpu.memory_space<vmem>>) attributes {dimension_semantics = [#tpu.dimension_semantics<parallel>], iteration_bounds = array<i64: 2>, scalar_prefetch = 0 : i64, scratch_operands = 0 : i64, tpu.core_type = #tpu.core_type<tc>, window_params = [{transform_indices = @transform_0, window_bounds = array<i64: 128, 16>}, {pipeline_mode = #tpu.pipeline_mode<synchronous>, transform_indices = @transform_1, window_bounds = array<i64: 16, 256>}, {pipeline_mode = #tpu.pipeline_mode<synchronous>, transform_indices = @transform_2, window_bounds = array<i64: 1, 256>}, {transform_indices = @transform_3, window_bounds = array<i64: 128, 128>}, {pipeline_mode = #tpu.pipeline_mode<synchronous>, transform_indices = @transform_4, window_bounds = array<i64: 256, 128>}, {transform_indices = @transform_5, window_bounds = array<i64: 128, 128>}]} {
    %c0 = arith.constant 0 : index
    %c0_0 = arith.constant 0 : index
    %0 = vector.load %arg1[%c0, %c0_0] : memref<128x16xf32, #tpu.memory_space<vmem>>, vector<128x16xf32>
    %c0_1 = arith.constant 0 : index
    %c0_2 = arith.constant 0 : index
    %1 = vector.load %arg2[%c0_1, %c0_2] : memref<16x256xf32, #tpu.memory_space<vmem>>, vector<16x256xf32>
    %c0_3 = arith.constant 0 : index
    %c0_4 = arith.constant 0 : index
    %2 = vector.load %arg3[%c0_3, %c0_4] : memref<1x256xf32, #tpu.memory_space<vmem>>, vector<1x256xf32>
    %c0_5 = arith.constant 0 : index
    %c0_6 = arith.constant 0 : index
    %3 = vector.load %arg4[%c0_5, %c0_6] : memref<128x128xf32, #tpu.memory_space<vmem>>, vector<128x128xf32>
    %c0_7 = arith.constant 0 : index
    %c0_8 = arith.constant 0 : index
    %4 = vector.load %arg5[%c0_7, %c0_8] : memref<256x128xf32, #tpu.memory_space<vmem>>, vector<256x128xf32>
    %5 = arith.mulf %0, %0 : vector<128x16xf32>
    %cst = arith.constant dense<0.000000e+00> : vector<128xf32>
    %6 = vector.multi_reduction <add>, %5, %cst [1] : vector<128x16xf32> to vector<128xf32>
    %7 = vector.shape_cast %6 : vector<128xf32> to vector<128x1xf32>
    %cst_9 = arith.constant dense<0.000000e+00> : vector<128x256xf32>
    %8 = tpu.matmul %0, %1, %cst_9 {dimension_numbers = #tpu.dot_dimension_numbers<[1], [0], [0], [1], [0, 0, 1, 1], [], []>} : vector<128x16xf32>, vector<16x256xf32>, vector<128x256xf32> -> vector<128x256xf32>
    %9 = vector.broadcast %7 : vector<128x1xf32> to vector<128x256xf32>
    %10 = vector.broadcast %2 : vector<1x256xf32> to vector<128x256xf32>
    %11 = arith.addf %9, %10 : vector<128x256xf32>
    %cst_10 = arith.constant 2.000000e+00 : f32
    %12 = vector.broadcast %cst_10 : f32 to vector<128x256xf32>
    %13 = arith.mulf %12, %8 : vector<128x256xf32>
    %14 = arith.subf %11, %13 : vector<128x256xf32>
    %15 = tpu.iota {dimensions = array<i32: 1>} : vector<128x256xi32>
    %16 = tpu.iota {dimensions = array<i32: 0>} : vector<128x256xi32>
    %c128_i32 = arith.constant 128 : i32
    %17 = arith.muli %arg0, %c128_i32 : i32
    %18 = vector.broadcast %17 : i32 to vector<128x256xi32>
    %19 = arith.addi %16, %18 : vector<128x256xi32>
    %20 = arith.cmpi eq, %19, %15 : vector<128x256xi32>
    %cst_11 = arith.constant 1.000000e+30 : f32
    %21 = vector.broadcast %cst_11 : f32 to vector<128x256xf32>
    %22 = arith.select %20, %21, %14 : vector<128x256xi1>, vector<128x256xf32>
    %cst_12 = arith.constant -1.000000e+30 : f32
    %23 = vector.broadcast %cst_12 : f32 to vector<128x128xf32>
    %cst_13 = arith.constant 1.000000e+30 : f32
    %c0_i32 = arith.constant 0 : i32
    %c9_i32 = arith.constant 9 : i32
    %24 = arith.addi %c0_i32, %c9_i32 : i32
    %c1_i32 = arith.constant 1 : i32
    %25:2 = scf.for %arg7 = %c0_i32 to %24 step %c1_i32 iter_args(%arg8 = %22, %arg9 = %23) -> (vector<128x256xf32>, vector<128x128xf32>)  : i32 {
      %27 = tpu.iota {dimensions = array<i32: 1>} : vector<128x256xi32>
      %cst_16 = arith.constant dense<0x7F800000> : vector<128xf32>
      %28 = vector.multi_reduction <minimumf>, %arg8, %cst_16 [1] : vector<128x256xf32> to vector<128xf32>
      %29 = vector.shape_cast %28 : vector<128xf32> to vector<128x1xf32>
      %30 = vector.broadcast %29 : vector<128x1xf32> to vector<128x256xf32>
      %31 = arith.cmpf ole, %arg8, %30 : vector<128x256xf32>
      %c256_i32 = arith.constant 256 : i32
      %32 = vector.broadcast %c256_i32 : i32 to vector<128x256xi32>
      %33 = arith.select %31, %27, %32 : vector<128x256xi1>, vector<128x256xi32>
      %cst_17 = arith.constant dense<2147483647> : vector<128xi32>
      %34 = vector.multi_reduction <minsi>, %33, %cst_17 [1] : vector<128x256xi32> to vector<128xi32>
      %35 = vector.shape_cast %34 : vector<128xi32> to vector<128x1xi32>
      %36 = vector.broadcast %35 : vector<128x1xi32> to vector<128x256xi32>
      %37 = arith.cmpi eq, %27, %36 : vector<128x256xi32>
      %38 = arith.extui %37 : vector<128x256xi1> to vector<128x256xi32>
      %39 = arith.sitofp %38 : vector<128x256xi32> to vector<128x256xf32>
      %cst_18 = arith.constant dense<0.000000e+00> : vector<128x128xf32>
      %40 = tpu.matmul %39, %4, %cst_18 {dimension_numbers = #tpu.dot_dimension_numbers<[1], [0], [0], [1], [0, 0, 1, 1], [], []>} : vector<128x256xf32>, vector<256x128xf32>, vector<128x128xf32> -> vector<128x128xf32>
      %41 = arith.addf %3, %40 : vector<128x128xf32>
      %cst_19 = arith.constant 0.000000e+00 : f32
      %42 = vector.broadcast %cst_19 : f32 to vector<128x128xf32>
      %43 = arith.maximumf %41, %42 : vector<128x128xf32>
      %44 = arith.maximumf %arg9, %43 : vector<128x128xf32>
      %45 = vector.broadcast %cst_13 : f32 to vector<128x256xf32>
      %46 = arith.mulf %39, %45 : vector<128x256xf32>
      %47 = arith.addf %arg8, %46 : vector<128x256xf32>
      scf.yield %47, %44 : vector<128x256xf32>, vector<128x128xf32>
    }
    %c0_14 = arith.constant 0 : index
    %c0_15 = arith.constant 0 : index
    %26 = vector.load %arg6[%c0_14, %c0_15] : memref<128x128xf32, #tpu.memory_space<vmem>>, vector<128x128xf32>
    tpu.vector_store %arg6[%c0_14, %c0_15], %25#1 {strides = array<i32>} : memref<128x128xf32, #tpu.memory_space<vmem>>, vector<128x128xf32>,
    return
  }
  func.func @transform_0(%arg0: i32) -> (i32, i32) {
    %c0_i32 = arith.constant 0 : i32
    %c0_i32_0 = arith.constant 0 : i32
    return %arg0, %c0_i32 : i32, i32
  }
  func.func @transform_1(%arg0: i32) -> (i32, i32) {
    %c0_i32 = arith.constant 0 : i32
    %c0_i32_0 = arith.constant 0 : i32
    %c0_i32_1 = arith.constant 0 : i32
    return %c0_i32, %c0_i32_0 : i32, i32
  }
  func.func @transform_2(%arg0: i32) -> (i32, i32) {
    %c0_i32 = arith.constant 0 : i32
    %c0_i32_0 = arith.constant 0 : i32
    %c0_i32_1 = arith.constant 0 : i32
    return %c0_i32, %c0_i32_0 : i32, i32
  }
  func.func @transform_3(%arg0: i32) -> (i32, i32) {
    %c0_i32 = arith.constant 0 : i32
    %c0_i32_0 = arith.constant 0 : i32
    return %arg0, %c0_i32 : i32, i32
  }
  func.func @transform_4(%arg0: i32) -> (i32, i32) {
    %c0_i32 = arith.constant 0 : i32
    %c0_i32_0 = arith.constant 0 : i32
    %c0_i32_1 = arith.constant 0 : i32
    return %c0_i32, %c0_i32_0 : i32, i32
  }
  func.func @transform_5(%arg0: i32) -> (i32, i32) {
    %c0_i32 = arith.constant 0 : i32
    %c0_i32_0 = arith.constant 0 : i32
    return %arg0, %c0_i32 : i32, i32
  }
}

</mosaic_0001>

<bundles_post_ra>
// kernel: tpu_custom_call.1
= control target key start
LH: loop header
LB: loop body
LE: loop exit
PB: predicated region body
PF: predicated region fallthrough
CT: control target
= control target key end

     0   :  { %10 = vsyncpa [#allocation3], 0  ;;  %s4546_s0 = inlined_call_operand.vmem [shape: f32[256,16], index: 0, kind: input, shape index: {}]   ;;  %s4547_s1 = inlined_call_operand.vmem [shape: f32[16,256], index: 1, kind: input, shape index: {}]   ;;  %s4548_s2 = inlined_call_operand.vmem [shape: f32[1,256], index: 2, kind: input, shape index: {}]   ;;  %s4549_s3 = inlined_call_operand.vmem [shape: f32[256,128], index: 3, kind: input, shape index: {}]   ;;  %s4550_s4 = inlined_call_operand.hbm [shape: f32[256,128], index: 4, kind: input, shape index: {}]   ;;  %s4551_s5 = inlined_call_operand.hbm [shape: f32[256,128], index: 5, kind: output, shape index: {}]  }
   0x1   :  { %11 = vsyncpa [#allocation4], 0 }
   0x2   :  { %13 = vsyncpa [#allocation4 + $0x1], 0  ;;  %s2932_s18 = smov 0   ;;  %s2934_s19 = smov 0  }
   0x3   :  { %s2936_s20 = smov 0   ;;  %s2938_s21 = smov 0  }
   0x4 LB: > { %s2953_s22 = sadd.s32 4294967295, %s2697_s21   ;;  %s1807_s23 = sadd.s32 4294967294, %s2697_s21   ;;  %s2697_s21 = sphi %s2938_s21, %s4818_s21   ;;  %s2693_s20 = sphi %s2936_s20, %s4817_s20   ;;  %s2689_s19 = sphi %s2934_s19, %s4816_s19   ;;  %s2685_s18 = sphi %s2932_s18, %s4815_s18  }
   0x5   : > { %s2957_s24 = sadd.s32 1, %s2697_s21   ;;  %s141_s25 = sadd.s32 1, %s2693_s20 }
   0x6   : > { %s138_s26 = ssub.s32 %s2697_s21, %s2957_s24  ;;  %p151_p0 = scmp.ne.s32.totalorder %s2693_s20, %s2689_s19 }
   0x7   : > { %p139_p1 = scmp.eq.s32.totalorder %s138_s26, 0  ;;  %p152_p2 = scmp.eq.s32.totalorder %s2953_s22, 1 }
   0x8   : > { %p157_p3 = scmp.ne.s32.totalorder %s2689_s19, %s2685_s18  ;;  %p158_p4 = scmp.eq.s32.totalorder %s1807_s23, 1 }
   0x9   : > { %s2968_s27 = scalar_select %p139_p1, %s2693_s20, %s141_s25  }
   0xa   : > { %p2970_p5 = por %p152_p2, %p151_p0  ;;  %p2974_p6 = por %p158_p4, %p157_p3 }
   0xb   : > { %p1808_p7 = scmp.ge.s32.totalorder %s2697_s21, 1  ;;  %p165_p8 = scmp.lt.s32.totalorder %s2697_s21, 3 }
   0xc   : > { %p1971_p9 = scmp.eq.s32.totalorder %s2953_s22, 0  ;;  %s182_s7 = sshll.u32 %s4550_s4, 4  ;;  %s183_s7 = int_to_ptr.hbm [resolvable:$true] %s182_s7 }
   0xd   : > { %p166_p10 = pnand %p1808_p7, %p165_p8  ;;  %s2895_s8 = smov [#allocation2]  }
   0xe   : > { %s184_s9 = sshll.u32 %s2895_s8, 4  ;;  %s2896_s10 = smov 128   ;;  %s185_s9 = int_to_ptr.vmem [resolvable:$true] %s184_s9 }
   0xf   : > { %p1963_p11 = pneg %p166_p10  ;;  %s2897_s11 = smov 8  }
  0x10   : > { %218 = sbr.rel (%p166_p10) target bundleno = 880 (0x370), region = 40 }
  0x11   : > { %p1964_p12 = pnand %p1971_p9, %p1963_p11 }
  0x13   : > { %1966 = dma.hbm_to_vmem [thread:$0]  (!%p1964_p12), %s183_s7, 4096, %s185_s9, [#allocation3], %s2896_s10, %s2896_s10, %s2897_s11  }
  0x15   : > { %2676 = dma.done.wait (%p1971_p9), [#allocation3], 4096  }
  0x16   : > { %2678 = vsyncadd (%p1971_p9), [#allocation3], 4294963200  ;;  %s249_s12 = sand.u32 1, %s2689_s19   ;;  %s1814_s14 = sshll.u32 %s2953_s22, 4  ;;  %v2996_v0 = vld [vmem:[#allocation2] sm:$0xff]  ;;  %v2998_v1 = vld [vmem:[#allocation2 + $0x8] sm:$0xff] }
  0x17   : > { %s2993_s13 = sshll.u32 %s249_s12, 7  ;;  %4620 = vst [vmem:[#allocation8_spill] sm:$0xff] %v2996_v0  ;;  %v3000_v2 = vld [vmem:[#allocation2 + $0x10] sm:$0xff]  ;;  %p253_p13 = scmp.lt.s32.totalorder %s1814_s14, 31  ;;  %v3002_v3 = vld [vmem:[#allocation2 + $0x18] sm:$0xff]  ;;  %v3004_v4 = vld [vmem:[#allocation2 + $0x20] sm:$0xff] }
  0x18   : > { %4621 = vst [vmem:[#allocation9_spill] sm:$0xff] %v2998_v1  ;;  %v3006_v5 = vld [vmem:[#allocation2 + $0x28] sm:$0xff]  ;;  %v3008_v6 = vld [vmem:[#allocation2 + $0x30] sm:$0xff]  ;;  %v3010_v7 = vld [vmem:[#allocation2 + $0x38] sm:$0xff]  ;;  %vm350_vm0 = vcmask 130048   ;;  %s3412_s25 = scalar_lea.vmem [#allocation5], %s2993_s13 }
  0x19   : > { %4622 = vst [vmem:[#allocation10_spill] sm:$0xff] %v3000_v2  ;;  %v3012_v8 = vld [vmem:[#allocation2 + $0x40] sm:$0xff]  ;;  %v3014_v9 = vld [vmem:[#allocation2 + $0x48] sm:$0xff]  ;;  %v3016_v10 = vld [vmem:[#allocation2 + $0x50] sm:$0xff]  ;;  %s4820_s14 = smov (!%p253_p13, %s1814_s14), 31  ;;  %s3536_s13 = smov 0  }
  0x1a   : > { %4623 = vst [vmem:[#allocation11_spill] sm:$0xff] %v3002_v3  ;;  %v3018_v11 = vld [vmem:[#allocation2 + $0x58] sm:$0xff]  ;;  %v3020_v12 = vld [vmem:[#allocation2 + $0x60] sm:$0xff]  ;;  %v3022_v13 = vld [vmem:[#allocation2 + $0x68] sm:$0xff]  ;;  %s1815_s15 = sshll.u32 %s4820_s14, 3 }
  0x1b   : > { %4624 = vst [vmem:[#allocation12_spill] sm:$0xff] %v3004_v4  ;;  %v3024_v14 = vld [vmem:[#allocation2 + $0x70] sm:$0xff]  ;;  %v3026_v15 = vld [vmem:[#allocation2 + $0x78] sm:$0xff]  ;;  %v3028_v16 = vld [vmem:[#allocation2 + $0x80] sm:$0xff]  ;;  %s3059_s23 = scalar_lea.vmem %s4549_s3, %s1815_s15  ;;  %s3080_s16 = scalar_lea.vmem %s4546_s0, %s1815_s15 }
  0x1c   : > { %4625 = vst [vmem:[#allocation13_spill] sm:$0xff] %v3006_v5  ;;  %v3030_v17 = vld [vmem:[#allocation2 + $0x88] sm:$0xff]  ;;  %v3032_v18 = vld [vmem:[#allocation2 + $0x90] sm:$0xff]  ;;  %v3034_v19 = vld [vmem:[#allocation2 + $0x98] sm:$0xff] }
  0x1d   : > { %4626 = vst [vmem:[#allocation14_spill] sm:$0xff] %v3008_v6  ;;  %v3036_v20 = vld [vmem:[#allocation2 + $0xa0] sm:$0xff]  ;;  %v3038_v21 = vld [vmem:[#allocation2 + $0xa8] sm:$0xff]  ;;  %v3040_v22 = vld [vmem:[#allocation2 + $0xb0] sm:$0xff] }
  0x1e   : > { %4627 = vst [vmem:[#allocation15_spill] sm:$0xff] %v3010_v7  ;;  %v3042_v23 = vld [vmem:[#allocation2 + $0xb8] sm:$0xff]  ;;  %v3044_v24 = vld [vmem:[#allocation2 + $0xc0] sm:$0xff]  ;;  %v3046_v25 = vld [vmem:[#allocation2 + $0xc8] sm:$0xff] }
  0x1f   : > { %4628 = vst [vmem:[#allocation16_spill] sm:$0xff] %v3012_v8  ;;  %v3048_v26 = vld [vmem:[#allocation2 + $0xd0] sm:$0xff]  ;;  %v3050_v27 = vld [vmem:[#allocation2 + $0xd8] sm:$0xff]  ;;  %v3052_v28 = vld [vmem:[#allocation2 + $0xe0] sm:$0xff] }
  0x20   : > { %4629 = vst [vmem:[#allocation17_spill] sm:$0xff] %v3014_v9  ;;  %v3054_v29 = vld [vmem:[#allocation2 + $0xe8] sm:$0xff]  ;;  %v3061_v30 = vld [vmem:[#allocation2 + $0xf0] sm:$0xff]  ;;  %v3063_v31 = vld [vmem:[#allocation2 + $0xf8] sm:$0xff] }
  0x21   : > { %4630 = vst [vmem:[#allocation18_spill] sm:$0xff] %v3016_v10  ;;  %v283_v32 = vld [vmem:[%s4547_s1 + $0x10] sm:$0xff]  ;;  %v284_v33 = vld [vmem:[%s4547_s1 + $0x18] sm:$0xff]  ;;  %v281_v34 = vld [vmem:[%s4547_s1] sm:$0xff] }
  0x22   : > { %4631 = vst [vmem:[#allocation19_spill] sm:$0xff] %v3018_v11  ;;  %461 = vmatpush.msra.mxu0 %v283_v32  ;;  %1921 = vmatpush.msra.mxu2 %v283_v32  ;;  %v282_v35 = vld [vmem:[%s4547_s1 + $0x8] sm:$0xff]  ;;  %v273_v36 = vld [vmem:[%s3080_s16 + $0x40] sm:$0xff]  ;;  %v3090_v39 = vld [vmem:[%s3059_s23 + $0x10] sm:$0xff] }
  0x23   : > { %4632 = vst [vmem:[#allocation20_spill] sm:$0xff] %v3020_v12  ;;  %526 = vmatpush.msra.mxu1 %v284_v33  ;;  %1923 = vmatpush.msra.mxu3 %v284_v33  ;;  %v3084_v37 = vld [vmem:[%s3059_s23] sm:$0xff]  ;;  %v3087_v38 = vld [vmem:[%s3059_s23 + $0x8] sm:$0xff]  ;;  %v3093_v40 = vld [vmem:[%s3059_s23 + $0x18] sm:$0xff] }
  0x24   : > { %4633 = vst [vmem:[#allocation21_spill] sm:$0xff] %v3022_v13  ;;  %462 = vmatpush.msra.mxu0 %v281_v34  ;;  %1922 = vmatpush.msra.mxu2 %v281_v34  ;;  %v3096_v41 = vld [vmem:[%s3059_s23 + $0x20] sm:$0xff]  ;;  %v3099_v42 = vld [vmem:[%s3059_s23 + $0x28] sm:$0xff]  ;;  %v3102_v43 = vld [vmem:[%s3059_s23 + $0x30] sm:$0xff] }
  0x25   : > { %4634 = vst [vmem:[#allocation22_spill] sm:$0xff] %v3024_v14  ;;  %527 = vmatpush.msra.mxu1 %v282_v35  ;;  %1924 = vmatpush.msra.mxu3 %v282_v35  ;;  %v3105_v44 = vld [vmem:[%s3059_s23 + $0x38] sm:$0xff]  ;;  %v3108_v45 = vld [vmem:[%s3059_s23 + $0x40] sm:$0xff]  ;;  %v3111_v46 = vld [vmem:[%s3059_s23 + $0x48] sm:$0xff] }
  0x26   : > { %4635 = vst [vmem:[#allocation23_spill] sm:$0xff] %v3026_v15  ;;  %v3114_v47 = vld [vmem:[%s3059_s23 + $0x50] sm:$0xff]  ;;  %1826 = vmatmul.msk.f32.vlgmr.msra.gmra.mxu2 %vm350_vm0, %v273_v36  ;;  %1842 = vmatmul.msk.f32.vlgmr.msra.gmra.mxu3 %vm350_vm0, %v273_v36  ;;  %v3119_v48 = vld [vmem:[%s3059_s23 + $0x58] sm:$0xff]  ;;  %v3122_v49 = vld [vmem:[%s3059_s23 + $0x60] sm:$0xff] }
  0x27   : > { %4636 = vst [vmem:[#allocation24_spill] sm:$0xff] %v3028_v16  ;;  %v3125_v50 = vld [vmem:[%s3059_s23 + $0x68] sm:$0xff]  ;;  %v3128_v51 = vld [vmem:[%s3059_s23 + $0x70] sm:$0xff]  ;;  %v3131_v52 = vld [vmem:[%s3059_s23 + $0x78] sm:$0xff]  ;;  %s1850_s23 = sshll.u32 %s2953_s22, 7 }
  0x28   : > { %4637 = vst [vmem:[#allocation25_spill] sm:$0xff] %v3030_v17  ;;  %v3134_v53 = vld [vmem:[%s3080_s16 + $0x20] sm:$0xff]  ;;  %v3142_v57 = vld [vmem:[%s3080_s16 + $0x28] sm:$0xff]  ;;  %v267_v58 = vld [vmem:[%s3080_s16 + $0x10] sm:$0xff] }
  0x29   : > { %4638 = vst [vmem:[#allocation26_spill] sm:$0xff] %v3032_v18  ;;  %v338_v54 = vmul.f32 %v3134_v53, %v3134_v53  ;;  %v265_v55 = vld [vmem:[%s3080_s16] sm:$0xff]  ;;  %v274_v60 = vld [vmem:[%s3080_s16 + $0x48] sm:$0xff]  ;;  %v336_v61 = vmul.f32 %v267_v58, %v267_v58  ;;  %v339_v32 = vmul.f32 %v3142_v57, %v3142_v57  ;;  %v268_v34 = vld [vmem:[%s3080_s16 + $0x18] sm:$0xff] }
  0x2a   : > { %4639 = vst [vmem:[#allocation27_spill] sm:$0xff] %v3034_v19  ;;  %1818 = vmatmul.msk.f32.vlgmr.msra.gmra.mxu0 %vm350_vm0, %v265_v55  ;;  %1834 = vmatmul.msk.f32.vlgmr.msra.gmra.mxu1 %vm350_vm0, %v265_v55  ;;  %v334_v56 = vmul.f32 %v265_v55, %v265_v55  ;;  %v266_v62 = vld [vmem:[%s3080_s16 + $0x8] sm:$0xff] }
  0x2b   : > { %4640 = vst [vmem:[#allocation28_spill] sm:$0xff] %v3036_v20  ;;  %v363_v59 = vsel %vm350_vm0, %v338_v54, 0.0  ;;  %v357_v33 = vsel %vm350_vm0, %v336_v61, 0.0  ;;  %v335_v35 = vmul.f32 %v266_v62, %v266_v62  ;;  %v337_v54 = vmul.f32 %v268_v34, %v268_v34  ;;  %v271_v61 = vld [vmem:[%s3080_s16 + $0x30] sm:$0xff] }
  0x2c   : > { %4641 = vst [vmem:[#allocation29_spill] sm:$0xff] %v3038_v21  ;;  %364 = vadd.xlane.f32.xlu2 %v363_v59  ;;  %v351_v63 = vsel %vm350_vm0, %v334_v56, 0.0  ;;  %358 = vadd.xlane.f32.xlu1 %v357_v33  ;;  %v366_v55 = vsel %vm350_vm0, %v339_v32, 0.0  ;;  %v275_v59 = vld [vmem:[%s3080_s16 + $0x50] sm:$0xff]  ;;  %v340_v32 = vmul.f32 %v271_v61, %v271_v61 }
  0x2d   : > { %4642 = vst [vmem:[#allocation30_spill] sm:$0xff] %v3040_v22  ;;  %352 = vadd.xlane.f32.xlu0 %v351_v63  ;;  %v354_v56 = vsel %vm350_vm0, %v335_v35, 0.0  ;;  %v360_v63 = vsel %vm350_vm0, %v337_v54, 0.0  ;;  %v276_v54 = vld [vmem:[%s3080_s16 + $0x58] sm:$0xff] }
  0x2e   : > { %4643 = vst [vmem:[#allocation31_spill] sm:$0xff] %v3042_v23  ;;  %1827 = vmatmul.msk.f32.gmra.mxu2 %vm350_vm0, %v274_v60  ;;  %1843 = vmatmul.msk.f32.gmra.mxu3 %vm350_vm0, %v274_v60  ;;  %v369_v35 = vsel %vm350_vm0, %v340_v32, 0.0  ;;  %v277_v32 = vld [vmem:[%s3080_s16 + $0x60] sm:$0xff] }
  0x2f   : > { %4644 = vst [vmem:[#allocation32_spill] sm:$0xff] %v3044_v24 }
  0x30   : > { %4645 = vst [vmem:[#allocation33_spill] sm:$0xff] %v3046_v25 }
  0x31   : > { %4646 = vst [vmem:[#allocation34_spill] sm:$0xff] %v3048_v26 }
  0x32   : > { %4647 = vst [vmem:[#allocation35_spill] sm:$0xff] %v3050_v27  ;;  %1819 = vmatmul.msk.f32.gmra.mxu0 %vm350_vm0, %v266_v62  ;;  %1835 = vmatmul.msk.f32.gmra.mxu1 %vm350_vm0, %v266_v62 }
  0x33   : > { %4648 = vst [vmem:[#allocation36_spill] sm:$0xff] %v3052_v28 }
  0x34   : > { %4649 = vst [vmem:[#allocation37_spill] sm:$0xff] %v3054_v29  ;;  %367 = vadd.xlane.f32.xlu2 %v366_v55  ;;  %361 = vadd.xlane.f32.xlu1 %v360_v63  ;;  %v345_v55 = vmul.f32 %v276_v54, %v276_v54 }
  0x35   : > { %4650 = vst [vmem:[#allocation38_spill] sm:$0xff] %v3061_v30  ;;  %355 = vadd.xlane.f32.xlu0 %v354_v56  ;;  %v343_v56 = vmul.f32 %v274_v60, %v274_v60  ;;  %v346_v60 = vmul.f32 %v277_v32, %v277_v32 }
  0x36   : > { %4651 = vst [vmem:[#allocation39_spill] sm:$0xff] %v3063_v31  ;;  %1828 = vmatmul.msk.f32.gmra.mxu2 %vm350_vm0, %v275_v59  ;;  %1844 = vmatmul.msk.f32.gmra.mxu3 %vm350_vm0, %v275_v59 }
  0x37   : > { %4652 = vst [vmem:[#allocation40_spill] sm:$0xff] %v3084_v37  ;;  %v378_v63 = vsel %vm350_vm0, %v343_v56, 0.0  ;;  %v280_v56 = vld [vmem:[%s3080_s16 + $0x78] sm:$0xff] }
  0x38   : > { %4653 = vst [vmem:[#allocation41_spill] sm:$0xff] %v3087_v38 }
  0x39   : > { %4654 = vst [vmem:[#allocation42_spill] sm:$0xff] %v3090_v39 }
  0x3a   : > { %4655 = vst [vmem:[#allocation43_spill] sm:$0xff] %v3093_v40  ;;  %1820 = vmatmul.msk.f32.gmra.mxu0 %vm350_vm0, %v267_v58  ;;  %1836 = vmatmul.msk.f32.gmra.mxu1 %vm350_vm0, %v267_v58  ;;  %v384_v58 = vsel %vm350_vm0, %v345_v55, 0.0 }
  0x3b   : > { %4656 = vst [vmem:[#allocation44_spill] sm:$0xff] %v3096_v41 }
  0x3c   : > { %4657 = vst [vmem:[#allocation45_spill] sm:$0xff] %v3099_v42 }
  0x3d   : > { %4658 = vst [vmem:[#allocation46_spill] sm:$0xff] %v3102_v43  ;;  %370 = vadd.xlane.f32.xlu0 %v369_v35 }
  0x3e   : > { %4659 = vst [vmem:[#allocation47_spill] sm:$0xff] %v3105_v44  ;;  %v342_v44 = vmul.f32 %v273_v36, %v273_v36  ;;  %1829 = vmatmul.msk.f32.gmra.mxu2 %vm350_vm0, %v276_v54  ;;  %1845 = vmatmul.msk.f32.gmra.mxu3 %vm350_vm0, %v276_v54 }
  0x3f   : > { %4660 = vst [vmem:[#allocation48_spill] sm:$0xff] %v3108_v45 }
  0x40   : > { %4661 = vst [vmem:[#allocation49_spill] sm:$0xff] %v3111_v46  ;;  %v375_v62 = vsel %vm350_vm0, %v342_v44, 0.0  ;;  %v344_v44 = vmul.f32 %v275_v59, %v275_v59  ;;  %v278_v59 = vld [vmem:[%s3080_s16 + $0x68] sm:$0xff] }
  0x41   : > { %4662 = vst [vmem:[#allocation50_spill] sm:$0xff] %v3114_v47  ;;  %376 = vadd.xlane.f32.xlu2 %v375_v62  ;;  %v279_v62 = vld [vmem:[%s3080_s16 + $0x70] sm:$0xff]  ;;  %v347_v54 = vmul.f32 %v278_v59, %v278_v59 }
  0x42   : > { %4663 = vst [vmem:[#allocation51_spill] sm:$0xff] %v3119_v48  ;;  %1821 = vmatmul.msk.f32.gmra.mxu0 %vm350_vm0, %v268_v34  ;;  %1837 = vmatmul.msk.f32.gmra.mxu1 %vm350_vm0, %v268_v34  ;;  %v348_v35 = vmul.f32 %v279_v62, %v279_v62 }
  0x43   : > { %4664 = vst [vmem:[#allocation52_spill] sm:$0xff] %v3122_v49  ;;  %v390_v55 = vsel %vm350_vm0, %v347_v54, 0.0 }
  0x44   : > { %4665 = vst [vmem:[#allocation53_spill] sm:$0xff] %v3125_v50  ;;  %v393_v34 = vsel %vm350_vm0, %v348_v35, 0.0  ;;  %v3220_v35 = vstv %s1850_s23 }
  0x45   : > { %4666 = vst [vmem:[#allocation54_spill] sm:$0xff] %v3128_v51  ;;  %379 = vadd.xlane.f32.xlu0 %v378_v63  ;;  %v678_v63 = vlaneseq }
  0x46   : > { %4667 = vst [vmem:[#allocation55_spill] sm:$0xff] %v3131_v52  ;;  %v272_v52 = vld [vmem:[%s3080_s16 + $0x38] sm:$0xff]  ;;  %1830 = vmatmul.msk.f32.gmra.mxu2 %vm350_vm0, %v277_v32  ;;  %1846 = vmatmul.msk.f32.gmra.mxu3 %vm350_vm0, %v277_v32 }
  0x47   : > { %v341_v33 = vmul.f32 %v272_v52, %v272_v52 }
  0x49   : > { %v372_v36 = vsel %vm350_vm0, %v341_v33, 0.0  ;;  %v381_v33 = vsel %vm350_vm0, %v344_v44, 0.0  ;;  %385 = vadd.xlane.f32.xlu2 %v384_v58  ;;  %v349_v44 = vmul.f32 %v280_v56, %v280_v56 }
  0x4a   : > { %373 = vadd.xlane.f32.xlu1 %v372_v36  ;;  %1822 = vmatmul.msk.f32.gmra.mxu0 %vm350_vm0, %v3134_v53  ;;  %v387_v36 = vsel %vm350_vm0, %v346_v60, 0.0 }
  0x4b   : > { %1838 = vmatmul.msk.f32.gmra.mxu1 %vm350_vm0, %v3134_v53  ;;  %v396_v53 = vsel %vm350_vm0, %v349_v44, 0.0 }
  0x4d   : > { %388 = vadd.xlane.f32.xlu0 %v387_v36 }
  0x4e   : > { %1831 = vmatmul.msk.f32.gmra.mxu2 %vm350_vm0, %v278_v59  ;;  %1847 = vmatmul.msk.f32.gmra.mxu3 %vm350_vm0, %v278_v59 }
  0x51   : > { %394 = vadd.xlane.f32.xlu2 %v393_v34 }
  0x52   : > { %382 = vadd.xlane.f32.xlu1 %v381_v33  ;;  %1823 = vmatmul.msk.f32.gmra.mxu0 %vm350_vm0, %v3142_v57 }
  0x53   : > { %1839 = vmatmul.msk.f32.gmra.mxu1 %vm350_vm0, %v3142_v57  ;;  %v285_v57 = vld [vmem:[%s4548_s2] sm:$0x3] }
  0x54   : > { %v3212_v33 = vperm.slane %v285_v57, 0  ;;  %v3222_v60 = vperm.slane %v285_v57, 1 }
  0x55   : > { %397 = vadd.xlane.f32.xlu0 %v396_v53 }
  0x56   : > { %1832 = vmatmul.msk.f32.gmra.mxu2 %vm350_vm0, %v279_v62  ;;  %1848 = vmatmul.msk.f32.gmra.mxu3 %vm350_vm0, %v279_v62  ;;  %v3216_v62 = vand.u32 127, %v678_v63 }
  0x58   : > { %4668 = vst [vmem:[#allocation56_spill] sm:$0xff] %v3216_v62  ;;  %v3230_v34 = vadd.s32 128, %v3216_v62 }
  0x5a   : > { %391 = vadd.xlane.f32.xlu1 %v390_v55  ;;  %1824 = vmatmul.msk.f32.gmra.mxu0 %vm350_vm0, %v271_v61  ;;  %4669 = vst [vmem:[#allocation57_spill] sm:$0xff] %v3230_v34 }
  0x5b   : > { %1840 = vmatmul.msk.f32.gmra.mxu1 %vm350_vm0, %v271_v61 }
  0x5e   : > { %1833 = vmatmul.msk.f32.gmra.mxu2 %vm350_vm0, %v280_v56  ;;  %1849 = vmatmul.msk.f32.gmra.mxu3 %vm350_vm0, %v280_v56 }
  0x62   : > { %1825 = vmatmul.msk.f32.gmra.mxu0 %vm350_vm0, %v272_v52 }
  0x63   : > { %1841 = vmatmul.msk.f32.gmra.mxu1 %vm350_vm0, %v272_v52  ;;  %v3224_v52 = vshrl.u32 %v678_v63, 7 }
  0x65   : > { %v700_v59 = vadd.s32 %v3220_v35, %v3224_v52  ;;  %v690_v44 = vadd.s32 64, %v3224_v52  ;;  %v683_v42 = vadd.s32 8, %v3224_v52  ;;  %v692_v45 = vadd.s32 80, %v3224_v52 }
  0x66   : > { %v693_v2 = vadd.s32 88, %v3224_v52 }
  0x67   : > { %vm716_vm1 = vcmp.eq.s32.totalorder %v700_v59, %v3216_v62  ;;  %vm717_vm2 = vcmp.eq.s32.totalorder %v700_v59, %v3230_v34  ;;  %v708_v48 = vadd.s32 %v3220_v35, %v690_v44 }
  0x69   : > { %vm732_vm3 = vcmp.eq.s32.totalorder %v708_v48, %v3216_v62  ;;  %vm733_vm4 = vcmp.eq.s32.totalorder %v708_v48, %v3230_v34 }
  0x9f   : > { %v3209_v58 = vpop.xlane.xlu2 %364  ;;  %v3214_v61 = vpop.xlane.xlu1 %358 }
  0xa0   : > { %v353_v32 = vpop.xlane.xlu0 %352 }
  0xa1   : > { %v582_v54 = vadd.f32 %v3212_v33, %v353_v32  ;;  %v583_v36 = vadd.f32 %v3222_v60, %v353_v32 }
  0xa7   : > { %v3233_v55 = vpop.xlane.xlu2 %367  ;;  %v464_v56 = vpop.f32.mrf.mxu0 }
  0xa8   : > { %v356_v53 = vpop.xlane.xlu0 %355  ;;  %v614_v57 = vmul.f32 2.0, %v464_v56  ;;  %v529_v43 = vpop.f32.mrf.mxu1  ;;  %v701_v56 = vadd.s32 %v3220_v35, %v683_v42 }
  0xa9   : > { %v615_v63 = vmul.f32 2.0, %v529_v43  ;;  %v488_v51 = vpop.f32.mrf.mxu2  ;;  %v553_v50 = vpop.f32.mrf.mxu3  ;;  %v691_v43 = vadd.s32 72, %v3224_v52  ;;  %v584_v39 = vadd.f32 %v3212_v33, %v356_v53 }
  0xaa   : > { %v646_v49 = vsub.f32 %v582_v54, %v614_v57  ;;  %v3239_v41 = vpop.xlane.xlu1 %361  ;;  %v630_v38 = vmul.f32 2.0, %v488_v51  ;;  %v631_v46 = vmul.f32 2.0, %v553_v50  ;;  %v585_v54 = vadd.f32 %v3222_v60, %v356_v53 }
  0xab   : > { %v647_v32 = vsub.f32 %v583_v36, %v615_v63  ;;  %vm718_vm5 = vcmp.eq.s32.totalorder %v701_v56, %v3216_v62  ;;  %v709_v37 = vadd.s32 %v3220_v35, %v691_v43  ;;  %vm719_vm6 = vcmp.eq.s32.totalorder %v701_v56, %v3230_v34 }
  0xac   : > { %v3242_v40 = vsel %vm716_vm1, 1e+30, %v646_v49  }
  0xad   : > { %v3244_v47 = vsel %vm717_vm2, 1e+30, %v647_v32   ;;  %v684_v32 = vadd.s32 16, %v3224_v52  ;;  %vm734_vm7 = vcmp.eq.s32.totalorder %v709_v37, %v3216_v62  ;;  %vm735_vm8 = vcmp.eq.s32.totalorder %v709_v37, %v3230_v34 }
  0xaf   : > { %v467_v36 = vpop.f32.mrf.mxu0  ;;  %v702_v43 = vadd.s32 %v3220_v35, %v684_v32 }
  0xb0   : > { %v3254_v57 = vpop.xlane.xlu0 %370  ;;  %v616_v42 = vmul.f32 2.0, %v467_v36  ;;  %v532_v63 = vpop.f32.mrf.mxu1 }
  0xb1   : > { %v617_v50 = vmul.f32 2.0, %v532_v63  ;;  %v491_v51 = vpop.f32.mrf.mxu2  ;;  %v556_v53 = vpop.f32.mrf.mxu3  ;;  %vm720_vm9 = vcmp.eq.s32.totalorder %v702_v43, %v3216_v62  ;;  %vm721_vm10 = vcmp.eq.s32.totalorder %v702_v43, %v3230_v34 }
  0xb2   : > { %v648_v17 = vsub.f32 %v584_v39, %v616_v42  ;;  %v710_v39 = vadd.s32 %v3220_v35, %v692_v45  ;;  %v632_v56 = vmul.f32 2.0, %v491_v51  ;;  %v633_v48 = vmul.f32 2.0, %v556_v53 }
  0xb3   : > { %v649_v36 = vsub.f32 %v585_v54, %v617_v50  ;;  %v685_v45 = vadd.s32 24, %v3224_v52 }
  0xb4   : > { %v377_v59 = vpop.xlane.xlu2 %376  ;;  %v3271_v18 = vsel %vm718_vm5, 1e+30, %v648_v17   ;;  %vm736_vm11 = vcmp.eq.s32.totalorder %v710_v39, %v3216_v62  ;;  %vm737_vm12 = vcmp.eq.s32.totalorder %v710_v39, %v3230_v34  ;;  %v686_v39 = vadd.s32 32, %v3224_v52 }
  0xb5   : > { %v598_v49 = vadd.f32 %v3212_v33, %v377_v59  ;;  %v599_v44 = vadd.f32 %v3222_v60, %v377_v59 }
  0xb7   : > { %v662_v16 = vsub.f32 %v598_v49, %v630_v38  ;;  %v663_v0 = vsub.f32 %v599_v44, %v631_v46  ;;  %v3274_v38 = vsel %vm719_vm6, 1e+30, %v649_v36   ;;  %v586_v46 = vadd.f32 %v3212_v33, %v3214_v61 }
  0xb8   : > { %v380_v17 = vpop.xlane.xlu0 %379  ;;  %v535_v49 = vpop.f32.mrf.mxu1 }
  0xb9   : > { %v3265_v1 = vsel %vm732_vm3, 1e+30, %v662_v16   ;;  %v3269_v63 = vsel %vm733_vm4, 1e+30, %v663_v0   ;;  %v587_v16 = vadd.f32 %v3222_v60, %v3214_v61  ;;  %v470_v0 = vpop.f32.mrf.mxu0  ;;  %v600_v44 = vadd.f32 %v3212_v33, %v380_v17  ;;  %v494_v61 = vpop.f32.mrf.mxu2 }
  0xba   : > { %v618_v54 = vmul.f32 2.0, %v470_v0  ;;  %v601_v42 = vadd.f32 %v3222_v60, %v380_v17  ;;  %v619_v32 = vmul.f32 2.0, %v535_v49  ;;  %v559_v50 = vpop.f32.mrf.mxu3  ;;  %v634_v53 = vmul.f32 2.0, %v494_v61 }
  0xbb   : > { %v635_v36 = vmul.f32 2.0, %v559_v50  ;;  %v664_v19 = vsub.f32 %v600_v44, %v632_v56  ;;  %v588_v44 = vadd.f32 %v3212_v33, %v3239_v41 }
  0xbc   : > { %v650_v51 = vsub.f32 %v586_v46, %v618_v54  ;;  %v665_v3 = vsub.f32 %v601_v42, %v633_v48  ;;  %v651_v20 = vsub.f32 %v587_v16, %v619_v32  ;;  %v703_v46 = vadd.s32 %v3220_v35, %v685_v45  ;;  %v386_v49 = vpop.xlane.xlu2 %385 }
  0xbd   : > { %v3261_v59 = vpop.xlane.xlu1 %373  ;;  %v3300_v54 = vsel %vm734_vm7, 1e+30, %v664_v19   ;;  %v589_v45 = vadd.f32 %v3222_v60, %v3239_v41  ;;  %v605_v61 = vadd.f32 %v3222_v60, %v386_v49 }
  0xbe   : > { %v3293_v21 = vsel %vm720_vm9, 1e+30, %v650_v51   ;;  %v3304_v56 = vsel %vm735_vm8, 1e+30, %v665_v3   ;;  %v3308_v16 = vsel %vm721_vm10, 1e+30, %v651_v20   ;;  %v711_v3 = vadd.s32 %v3220_v35, %v693_v2 }
  0xbf   : > { %vm722_vm13 = vcmp.eq.s32.totalorder %v703_v46, %v3216_v62  ;;  %vm723_vm14 = vcmp.eq.s32.totalorder %v703_v46, %v3230_v34 }
  0xc0   : > { %v538_v43 = vpop.f32.mrf.mxu1  ;;  %vm738_vm15 = vcmp.eq.s32.totalorder %v711_v3, %v3216_v62  ;;  %vm739_vm0 = vcmp.eq.s32.totalorder %v711_v3, %v3230_v34  ;;  %v590_v3 = vadd.f32 %v3212_v33, %v3209_v58 }
  0xc1   : > { %v473_v37 = vpop.f32.mrf.mxu0  ;;  %v621_v50 = vmul.f32 2.0, %v538_v43  ;;  %v497_v51 = vpop.f32.mrf.mxu2  ;;  %v704_v43 = vadd.s32 %v3220_v35, %v686_v39  ;;  %v591_v39 = vadd.f32 %v3222_v60, %v3209_v58 }
  0xc2   : > { %v620_v20 = vmul.f32 2.0, %v473_v37  ;;  %v562_v41 = vpop.f32.mrf.mxu3 }
  0xc3   : > { %v637_v2 = vmul.f32 2.0, %v562_v41  ;;  %vm724_vm1 = vcmp.eq.s32.totalorder %v704_v43, %v3216_v62  ;;  %vm725_vm2 = vcmp.eq.s32.totalorder %v704_v43, %v3230_v34 }
  0xc5   : > { %v383_v0 = vpop.xlane.xlu1 %382 }
  0xc6   : > { %v602_v4 = vadd.f32 %v3212_v33, %v383_v0  ;;  %v603_v17 = vadd.f32 %v3222_v60, %v383_v0  ;;  %v653_v0 = vsub.f32 %v589_v45, %v621_v50 }
  0xc8   : > { %v666_v48 = vsub.f32 %v602_v4, %v634_v53  ;;  %v667_v42 = vsub.f32 %v603_v17, %v635_v36  ;;  %v604_v4 = vadd.f32 %v3212_v33, %v386_v49  ;;  %v652_v53 = vsub.f32 %v588_v44, %v620_v20  ;;  %v389_v44 = vpop.xlane.xlu0 %388  ;;  %v541_v41 = vpop.f32.mrf.mxu1 }
  0xc9   : > { %v636_v36 = vmul.f32 2.0, %v497_v51  ;;  %v694_v17 = vadd.s32 96, %v3224_v52  ;;  %v3331_v37 = vsel %vm723_vm14, 1e+30, %v653_v0   ;;  %v476_v45 = vpop.f32.mrf.mxu0  ;;  %v687_v0 = vadd.s32 40, %v3224_v52 }
  0xca   : > { %v3316_v19 = vsel %vm736_vm11, 1e+30, %v666_v48   ;;  %v3319_v32 = vsel %vm737_vm12, 1e+30, %v667_v42   ;;  %v3329_v48 = vsel %vm722_vm13, 1e+30, %v652_v53   ;;  %v669_v42 = vsub.f32 %v605_v61, %v637_v2  ;;  %v565_v2 = vpop.f32.mrf.mxu3 }
  0xcb   : > { %v668_v49 = vsub.f32 %v604_v4, %v636_v36  ;;  %v712_v50 = vadd.s32 %v3220_v35, %v694_v17  ;;  %v622_v51 = vmul.f32 2.0, %v476_v45  ;;  %v606_v4 = vadd.f32 %v3212_v33, %v389_v44  ;;  %v500_v36 = vpop.f32.mrf.mxu2 }
  0xcc   : > { %v3336_v46 = vsel %vm739_vm0, 1e+30, %v669_v42   ;;  %v607_v61 = vadd.f32 %v3222_v60, %v389_v44  ;;  %v623_v53 = vmul.f32 2.0, %v541_v41  ;;  %v639_v42 = vmul.f32 2.0, %v565_v2 }
  0xcd   : > { %v3334_v20 = vsel %vm738_vm15, 1e+30, %v668_v49   ;;  %v654_v17 = vsub.f32 %v590_v3, %v622_v51  ;;  %v638_v49 = vmul.f32 2.0, %v500_v36  ;;  %vm740_vm3 = vcmp.eq.s32.totalorder %v712_v50, %v3216_v62  ;;  %v392_v3 = vpop.xlane.xlu1 %391 }
  0xce   : > { %v655_v45 = vsub.f32 %v591_v39, %v623_v53  ;;  %vm741_vm4 = vcmp.eq.s32.totalorder %v712_v50, %v3230_v34  ;;  %v695_v44 = vadd.s32 104, %v3224_v52  ;;  %v671_v41 = vsub.f32 %v607_v61, %v639_v42 }
  0xcf   : > { %v3351_v58 = vsel %vm724_vm1, 1e+30, %v654_v17   ;;  %v670_v5 = vsub.f32 %v606_v4, %v638_v49  ;;  %v705_v6 = vadd.s32 %v3220_v35, %v687_v0  ;;  %v592_v50 = vadd.f32 %v3212_v33, %v3233_v55 }
  0xd0   : > { %v3353_v22 = vsel %vm725_vm2, 1e+30, %v655_v45   ;;  %v3358_v43 = vsel %vm741_vm4, 1e+30, %v671_v41   ;;  %v713_v53 = vadd.s32 %v3220_v35, %v695_v44  ;;  %v544_v2 = vpop.f32.mrf.mxu1  ;;  %v608_v4 = vadd.f32 %v3212_v33, %v392_v3 }
  0xd1   : > { %v3356_v51 = vsel %vm740_vm3, 1e+30, %v670_v5   ;;  %v479_v39 = vpop.f32.mrf.mxu0  ;;  %v609_v61 = vadd.f32 %v3222_v60, %v392_v3  ;;  %v593_v0 = vadd.f32 %v3222_v60, %v3233_v55  ;;  %vm726_vm5 = vcmp.eq.s32.totalorder %v705_v6, %v3216_v62 }
  0xd2   : > { %v624_v36 = vmul.f32 2.0, %v479_v39  ;;  %v625_v5 = vmul.f32 2.0, %v544_v2  ;;  %v568_v49 = vpop.f32.mrf.mxu3  ;;  %v688_v42 = vadd.s32 48, %v3224_v52  ;;  %vm727_vm6 = vcmp.eq.s32.totalorder %v705_v6, %v3230_v34 }
  0xd3   : > { %v503_v17 = vpop.f32.mrf.mxu2  ;;  %v641_v41 = vmul.f32 2.0, %v568_v49  ;;  %vm742_vm7 = vcmp.eq.s32.totalorder %v713_v53, %v3216_v62  ;;  %vm743_vm8 = vcmp.eq.s32.totalorder %v713_v53, %v3230_v34  ;;  %v696_v3 = vadd.s32 112, %v3224_v52 }
  0xd4   : > { %v656_v45 = vsub.f32 %v592_v50, %v624_v36  ;;  %v640_v44 = vmul.f32 2.0, %v503_v17  ;;  %v657_v39 = vsub.f32 %v593_v0, %v625_v5  ;;  %v706_v24 = vadd.s32 %v3220_v35, %v688_v42  ;;  %v395_v50 = vpop.xlane.xlu2 %394 }
  0xd5   : > { %v673_v2 = vsub.f32 %v609_v61, %v641_v41  ;;  %v714_v5 = vadd.s32 %v3220_v35, %v696_v3  ;;  %v594_v53 = vadd.f32 %v3212_v33, %v3254_v57  ;;  %v611_v61 = vadd.f32 %v3222_v60, %v395_v50 }
  0xd6   : > { %v3373_v55 = vsel %vm726_vm5, 1e+30, %v656_v45   ;;  %v672_v23 = vsub.f32 %v608_v4, %v640_v44  ;;  %v3375_v7 = vsel %vm727_vm6, 1e+30, %v657_v39   ;;  %v610_v4 = vadd.f32 %v3212_v33, %v395_v50 }
  0xd7   : > { %v3380_v6 = vsel %vm743_vm8, 1e+30, %v673_v2   ;;  %v595_v42 = vadd.f32 %v3222_v60, %v3254_v57  ;;  %vm728_vm9 = vcmp.eq.s32.totalorder %v706_v24, %v3216_v62  ;;  %v689_v41 = vadd.s32 56, %v3224_v52 }
  0xd8   : > { %v3378_v36 = vsel %vm742_vm7, 1e+30, %v672_v23   ;;  %v547_v49 = vpop.f32.mrf.mxu1  ;;  %vm729_vm10 = vcmp.eq.s32.totalorder %v706_v24, %v3230_v34  ;;  %vm744_vm11 = vcmp.eq.s32.totalorder %v714_v5, %v3216_v62  ;;  %vm745_vm12 = vcmp.eq.s32.totalorder %v714_v5, %v3230_v34 }
  0xd9   : > { %v482_v0 = vpop.f32.mrf.mxu0  ;;  %v627_v23 = vmul.f32 2.0, %v547_v49  ;;  %v697_v50 = vadd.s32 120, %v3224_v52  ;;  %v707_v9 = vadd.s32 %v3220_v35, %v689_v41 }
  0xda   : > { %v626_v17 = vmul.f32 2.0, %v482_v0  ;;  %v571_v44 = vpop.f32.mrf.mxu3 }
  0xdb   : > { %v506_v45 = vpop.f32.mrf.mxu2  ;;  %v643_v2 = vmul.f32 2.0, %v571_v44  ;;  %v659_v0 = vsub.f32 %v595_v42, %v627_v23  ;;  %v715_v42 = vadd.s32 %v3220_v35, %v697_v50  ;;  %v596_v23 = vadd.f32 %v3212_v33, %v3261_v59 }
  0xdc   : > { %v658_v39 = vsub.f32 %v594_v53, %v626_v17  ;;  %v642_v3 = vmul.f32 2.0, %v506_v45  ;;  %v398_v53 = vpop.xlane.xlu0 %397  ;;  %vm730_vm13 = vcmp.eq.s32.totalorder %v707_v9, %v3216_v62  ;;  %vm731_vm14 = vcmp.eq.s32.totalorder %v707_v9, %v3230_v34 }
  0xdd   : > { %v675_v49 = vsub.f32 %v611_v61, %v643_v2  ;;  %v3397_v25 = vsel %vm729_vm10, 1e+30, %v659_v0   ;;  %v612_v52 = vadd.f32 %v3212_v33, %v398_v53  ;;  %v597_v61 = vadd.f32 %v3222_v60, %v3261_v59 }
  0xde   : > { %v3395_v57 = vsel %vm728_vm9, 1e+30, %v658_v39   ;;  %v674_v8 = vsub.f32 %v610_v4, %v642_v3  ;;  %v613_v4 = vadd.f32 %v3222_v60, %v398_v53  ;;  %vm746_vm15 = vcmp.eq.s32.totalorder %v715_v42, %v3216_v62 }
  0xdf   : > { %v777_v24 = vsel %vm745_vm12, 1e+30, %v675_v49   ;;  %vm747_vm0 = vcmp.eq.s32.totalorder %v715_v42, %v3230_v34  ;;  %v3418_v9 = vmov -1e+30   ;;  %v3426_v42 = vmov -1e+30  }
  0xe0   : > { %v776_v17 = vsel %vm744_vm11, 1e+30, %v674_v8   ;;  %v550_v44 = vpop.f32.mrf.mxu1 }
  0xe1   : > { %v485_v45 = vpop.f32.mrf.mxu0  ;;  %v629_v41 = vmul.f32 2.0, %v550_v44  ;;  %v3422_v44 = vmov -1e+30  }
  0xe2   : > { %v628_v5 = vmul.f32 2.0, %v485_v45  ;;  %v574_v39 = vpop.f32.mrf.mxu3  ;;  %v3414_v45 = vmov -1e+30  }
  0xe3   : > { %v509_v8 = vpop.f32.mrf.mxu2  ;;  %v645_v2 = vmul.f32 2.0, %v574_v39  ;;  %v661_v0 = vsub.f32 %v597_v61, %v629_v41  ;;  %v3424_v61 = vmov -1e+30   ;;  %v3432_v41 = vmov -1e+30  }
  0xe4   : > { %v660_v3 = vsub.f32 %v596_v23, %v628_v5  ;;  %v644_v35 = vmul.f32 2.0, %v509_v8  ;;  %v3416_v23 = vmov -1e+30   ;;  %v3420_v5 = vmov -1e+30  }
  0xe5   : > { %v677_v49 = vsub.f32 %v613_v4, %v645_v2  ;;  %v763_v60 = vsel %vm731_vm14, 1e+30, %v661_v0   ;;  %v3430_v4 = vmov -1e+30   ;;  %v3434_v8 = vmov -1e+30  }
  0xe6   : > { %v762_v33 = vsel %vm730_vm13, 1e+30, %v660_v3   ;;  %v676_v50 = vsub.f32 %v612_v52, %v644_v35  ;;  %v3428_v52 = vmov -1e+30   ;;  %v3436_v39 = vmov -1e+30  }
  0xe7   : > { %v779_v53 = vsel %vm747_vm0, 1e+30, %v677_v49   ;;  %v3438_v3 = vmov -1e+30   ;;  %v3440_v35 = vmov -1e+30  }
  0xe8   : > { %v778_v59 = vsel %vm746_vm15, 1e+30, %v676_v50   ;;  %v3442_v2 = vmov -1e+30   ;;  %v3444_v0 = vmov -1e+30  }
  0xe9 LB: >> { %v4670_v62 = vld [vmem:[#allocation56_spill] sm:$0xff]  ;;  %v4671_v34 = vld [vmem:[#allocation57_spill] sm:$0xff]  ;;  %v4672_v31 = vld [vmem:[#allocation39_spill] sm:$0xff]  ;;  %4684 = vst [vmem:[#allocation58_spill] sm:$0xff] %v2701_v45  ;;  %v858_v50 = vmin.f32 %v2825_v1, %v2821_v63  ;;  %v861_v49 = vmin.f32 %v2817_v54, %v2813_v56  ;;  %s785_s26 = sadd.s32 1, %s2893_s13   ;;  %v2753_v35 = vphi %v3440_v35, %v4806_v35   ;;  %v2749_v3 = vphi %v3438_v3, %v4805_v3   ;;  %v2745_v39 = vphi %v3436_v39, %v4804_v39   ;;  %v2741_v8 = vphi %v3434_v8, %v4803_v8   ;;  %v2737_v41 = vphi %v3432_v41, %v4802_v41   ;;  %v2733_v4 = vphi %v3430_v4, %v4801_v4   ;;  %v2729_v52 = vphi %v3428_v52, %v4800_v52   ;;  %v2725_v42 = vphi %v3426_v42, %v4799_v42   ;;  %v2721_v61 = vphi %v3424_v61, %v4798_v61   ;;  %v2717_v44 = vphi %v3422_v44, %v4797_v44   ;;  %v2713_v5 = vphi %v3420_v5, %v4796_v5   ;;  %v2709_v9 = vphi %v3418_v9, %v4795_v9   ;;  %v2705_v23 = vphi %v3416_v23, %v4794_v23   ;;  %v2701_v45 = vphi %v3414_v45, %v4793_v45   ;;  %s2893_s13 = sphi %s3536_s13, %s4814_s13   ;;  %v2889_v40 = vphi %v3242_v40, %v4058_v40   ;;  %v2885_v47 = vphi %v3244_v47, %v4061_v47   ;;  %v2881_v18 = vphi %v3271_v18, %v4078_v18   ;;  %v2877_v38 = vphi %v3274_v38, %v4081_v38   ;;  %v2873_v21 = vphi %v3293_v21, %v4103_v21   ;;  %v2869_v16 = vphi %v3308_v16, %v4109_v16   ;;  %v2865_v48 = vphi %v3329_v48, %v4138_v48   ;;  %v2861_v37 = vphi %v3331_v37, %v4141_v37   ;;  %v2857_v58 = vphi %v3351_v58, %v4175_v58   ;;  %v2853_v22 = vphi %v3353_v22, %v4178_v22   ;;  %v2849_v55 = vphi %v3373_v55, %v4184_v55   ;;  %v2845_v7 = vphi %v3375_v7, %v4813_v7   ;;  %v2841_v57 = vphi %v3395_v57, %v4247_v57   ;;  %v2837_v25 = vphi %v3397_v25, %v4812_v25   ;;  %v2833_v33 = vphi %v762_v33, %v4811_v33   ;;  %v2829_v60 = vphi %v763_v60, %v4270_v60   ;;  %v2825_v1 = vphi %v3265_v1, %v4029_v1   ;;  %v2821_v63 = vphi %v3269_v63, %v4032_v63   ;;  %v2817_v54 = vphi %v3300_v54, %v4023_v54   ;;  %v2813_v56 = vphi %v3304_v56, %v4026_v56   ;;  %v2809_v19 = vphi %v3316_v19, %v4106_v19   ;;  %v2805_v32 = vphi %v3319_v32, %v4112_v32   ;;  %v2801_v20 = vphi %v3334_v20, %v4129_v20   ;;  %v2797_v46 = vphi %v3336_v46, %v4132_v46   ;;  %v2793_v51 = vphi %v3356_v51, %v4148_v51   ;;  %v2789_v43 = vphi %v3358_v43, %v4160_v43   ;;  %v2785_v36 = vphi %v3378_v36, %v4810_v36   ;;  %v2781_v6 = vphi %v3380_v6, %v4194_v6   ;;  %v2777_v17 = vphi %v776_v17, %v4216_v17   ;;  %v2773_v24 = vphi %v777_v24, %v4219_v24   ;;  %v2769_v59 = vphi %v778_v59, %v4237_v59   ;;  %v2765_v53 = vphi %v779_v53, %v4809_v53   ;;  %v2761_v0 = vphi %v3444_v0, %v4808_v0   ;;  %v2757_v2 = vphi %v3442_v2, %v4807_v2  }
  0xea   : >> { %v4673_v30 = vld [vmem:[#allocation38_spill] sm:$0xff]  ;;  %v4674_v29 = vld [vmem:[#allocation37_spill] sm:$0xff]  ;;  %v4675_v28 = vld [vmem:[#allocation36_spill] sm:$0xff]  ;;  %4685 = vst [vmem:[#allocation59_spill] sm:$0xff] %v2705_v23  ;;  %1941 = vmatpush.msra.mxu3 %v4672_v31  ;;  %1363 = vmatpush.msra.mxu1 %v4672_v31  ;;  %p4327_p0 = scmp.ge.s32.totalorder %s785_s26, 9   ;;  %s4814_s13 = smov %s785_s26 }
  0xeb   : >> { %v4676_v27 = vld [vmem:[#allocation35_spill] sm:$0xff]  ;;  %v4677_v26 = vld [vmem:[#allocation34_spill] sm:$0xff]  ;;  %v4679_v13 = vld [vmem:[#allocation21_spill] sm:$0xff]  ;;  %4686 = vst [vmem:[#allocation60_spill] sm:$0xff] %v2709_v9  ;;  %859 = vmin.xlane.f32.xlu0 %v858_v50  ;;  %862 = vmin.xlane.f32.xlu1 %v861_v49  ;;  %v837_v50 = vmin.f32 %v2881_v18, %v2877_v38  ;;  %v840_v49 = vmin.f32 %v2873_v21, %v2869_v16  ;;  %s1568_s8 = scalar_lea.hbm (%p4327_p0), %s4551_s5, %s1850_s23  ;;  %s1569_s9 = sshll.u32 (%p4327_p0), %s3412_s25, 4  ;;  %s1570_s9 = int_to_ptr.vmem [resolvable:$true] %s1569_s9 }
  0xec   : >> { %v4678_v10 = vld [vmem:[#allocation18_spill] sm:$0xff]  ;;  %v4680_v11 = vld [vmem:[#allocation19_spill] sm:$0xff]  ;;  %v4681_v12 = vld [vmem:[#allocation20_spill] sm:$0xff]  ;;  %4687 = vst [vmem:[#allocation61_spill] sm:$0xff] %v2713_v5  ;;  %1942 = vmatpush.msra.mxu3 %v4673_v30  ;;  %1364 = vmatpush.msra.mxu1 %v4673_v30  ;;  %v855_v5 = vmin.f32 %v2833_v33, %v2829_v60  ;;  %s1571_s10 = sshll.u32 (%p4327_p0), %s1568_s8, 4  ;;  %s1557_s22 = scalar_lea.sflag (%p4327_p0), [#allocation4], %s249_s12  ;;  %s1572_s10 = int_to_ptr.hbm [resolvable:$true] %s1571_s10 }
  0xed   : >> { %v4682_v14 = vld [vmem:[#allocation22_spill] sm:$0xff]  ;;  %v4683_v15 = vld [vmem:[#allocation23_spill] sm:$0xff]  ;;  %4688 = vst [vmem:[#allocation62_spill] sm:$0xff] %v2717_v44  ;;  %s2449_s11 = sshra.s32 (%p4327_p0), %s1572_s10, 4  ;;  %s2455_s17 = scalar_lea.hbm (%p4327_p0), %s4551_s5, 256  ;;  %s2450_s11 = int_to_ptr.hbm [resolvable:$true] %s2449_s11 }
  0xee   : >> { %4689 = vst [vmem:[#allocation63_spill] sm:$0xff] %v2721_v61  ;;  %1925 = vmatpush.msra.mxu2 %v4683_v15  ;;  %1298 = vmatpush.msra.mxu0 %v4683_v15  ;;  %v864_v15 = vmin.f32 %v2809_v19, %v2805_v32  ;;  %v4723_v30 = vld [vmem:[#allocation27_spill] sm:$0xff]  ;;  %s2451_s14 = scalar_lea.hbm (%p4327_p0), %s2450_s11, 128  ;;  %p2456_p4 = scmp.lt.s32.totalorder (%p4327_p0), %s2450_s11, %s4551_s5 }
  0xef   : >> { %4690 = vst [vmem:[#allocation64_spill] sm:$0xff] %v2725_v42  ;;  %1943 = vmatpush.msra.mxu3 %v4674_v29  ;;  %1365 = vmatpush.msra.mxu1 %v4674_v29  ;;  %v849_v29 = vmin.f32 %v2849_v55, %v2845_v7  ;;  %p2452_p1 = scmp.ne.s32.totalorder (%p4327_p0), %s2450_s11, %s2451_s14  ;;  %p2457_p7 = scmp.lt.s32.totalorder (%p4327_p0), %s2455_s17, %s2451_s14 }
  0xf0   : >> { %4691 = vst [vmem:[#allocation65_spill] sm:$0xff] %v2729_v52  ;;  %1926 = vmatpush.msra.mxu2 %v4682_v14  ;;  %1299 = vmatpush.msra.mxu0 %v4682_v14  ;;  %v834_v14 = vmin.f32 %v2889_v40, %v2885_v47 }
  0xf1   : >> { %4692 = vst [vmem:[#allocation66_spill] sm:$0xff] %v2733_v4  ;;  %1944 = vmatpush.msra.mxu3 %v4675_v28  ;;  %1366 = vmatpush.msra.mxu1 %v4675_v28  ;;  %v4716_v28 = vld [vmem:[#allocation14_spill] sm:$0xff]  ;;  %v879_v4 = vmin.f32 %v2769_v59, %v2765_v53  ;;  %p2453_p2 = pnand (%p4327_p0), %p2452_p1, %p2970_p5  ;;  %p2458_p8 = por (%p4327_p0), %p2457_p7, %p2456_p4 }
  0xf2   : >> { %4693 = vst [vmem:[#allocation67_spill] sm:$0xff] %v2737_v41  ;;  %1927 = vmatpush.msra.mxu2 %v4679_v13  ;;  %1300 = vmatpush.msra.mxu0 %v4679_v13  ;;  %v843_v13 = vmin.f32 %v2865_v48, %v2861_v37 }
  0xf3   : >> { %4694 = vst [vmem:[#allocation68_spill] sm:$0xff] %v2741_v8  ;;  %865 = vmin.xlane.f32.xlu2 %v864_v15  ;;  %1945 = vmatpush.msra.mxu3 %v4676_v27  ;;  %v4711_v15 = vld [vmem:[#allocation33_spill] sm:$0xff]  ;;  %p2454_p3 = pneg (%p4327_p0), %p2453_p2 }
  0xf4   : >> { %4695 = vst [vmem:[#allocation69_spill] sm:$0xff] %v2745_v39  ;;  %1928 = vmatpush.msra.mxu2 %v4681_v12  ;;  %1301 = vmatpush.msra.mxu0 %v4681_v12  ;;  %v4710_v12 = vld [vmem:[#allocation17_spill] sm:$0xff] }
  0xf5   : >> { %4696 = vst [vmem:[#allocation70_spill] sm:$0xff] %v2749_v3  ;;  %1367 = vmatpush.msra.mxu1 %v4676_v27  ;;  %835 = vmin.xlane.f32.xlu0 %v834_v14  ;;  %v867_v14 = vmin.f32 %v2801_v20, %v2797_v46  ;;  %v870_v27 = vmin.f32 %v2793_v51, %v2789_v43  ;;  %p2459_p9 = pnand (%p4327_p0), %p2458_p8, %p2454_p3 }
  0xf6   : >> { %4697 = vst [vmem:[#allocation71_spill] sm:$0xff] %v2753_v35  ;;  %1929 = vmatpush.msra.mxu2 %v4680_v11  ;;  %1302 = vmatpush.msra.mxu0 %v4680_v11  ;;  %v4712_v11 = vld [vmem:[#allocation16_spill] sm:$0xff] }
  0xf7   : >> { %4698 = vst [vmem:[#allocation72_spill] sm:$0xff] %v2757_v2  ;;  %838 = vmin.xlane.f32.xlu1 %v837_v50  ;;  %1946 = vmatpush.msra.mxu3 %v4677_v26  ;;  %v4713_v50 = vld [vmem:[#allocation32_spill] sm:$0xff] }
  0xf8   : >> { %4699 = vst [vmem:[#allocation73_spill] sm:$0xff] %v2761_v0  ;;  %1930 = vmatpush.msra.mxu2 %v4678_v10  ;;  %1303 = vmatpush.msra.mxu0 %v4678_v10  ;;  %v4714_v10 = vld [vmem:[#allocation15_spill] sm:$0xff] }
  0xf9   : >> { %4700 = vst [vmem:[#allocation74_spill] sm:$0xff] %v2765_v53  ;;  %1368 = vmatpush.msra.mxu1 %v4677_v26  ;;  %1947 = vmatpush.msra.mxu3 %v4711_v15  ;;  %v4715_v26 = vld [vmem:[#allocation31_spill] sm:$0xff] }
  0xfa   : >> { %4701 = vst [vmem:[#allocation75_spill] sm:$0xff] %v2773_v24  ;;  %1931 = vmatpush.msra.mxu2 %v4710_v12  ;;  %1304 = vmatpush.msra.mxu0 %v4710_v12  ;;  %v4717_v12 = vld [vmem:[#allocation30_spill] sm:$0xff] }
  0xfb   : >> { %4702 = vst [vmem:[#allocation76_spill] sm:$0xff] %v2777_v17  ;;  %1369 = vmatpush.msra.mxu1 %v4711_v15  ;;  %841 = vmin.xlane.f32.xlu2 %v840_v49  ;;  %v4718_v49 = vld [vmem:[#allocation13_spill] sm:$0xff]  ;;  %v873_v15 = vmin.f32 %v2785_v36, %v2781_v6 }
  0xfc   : >> { %4703 = vst [vmem:[#allocation77_spill] sm:$0xff] %v2781_v6  ;;  %1932 = vmatpush.msra.mxu2 %v4712_v11  ;;  %1948 = vmatpush.msra.mxu3 %v4713_v50 }
  0xfd   : >> { %4704 = vst [vmem:[#allocation78_spill] sm:$0xff] %v2785_v36  ;;  %1305 = vmatpush.msra.mxu0 %v4712_v11  ;;  %1370 = vmatpush.msra.mxu1 %v4713_v50  ;;  %v4719_v11 = vld [vmem:[#allocation29_spill] sm:$0xff] }
  0xfe   : >> { %4705 = vst [vmem:[#allocation79_spill] sm:$0xff] %v2829_v60  ;;  %1933 = vmatpush.msra.mxu2 %v4714_v10  ;;  %1949 = vmatpush.msra.mxu3 %v4715_v26 }
  0xff   : >> { %4706 = vst [vmem:[#allocation80_spill] sm:$0xff] %v2833_v33  ;;  %844 = vmin.xlane.f32.xlu1 %v843_v13  ;;  %868 = vmin.xlane.f32.xlu0 %v867_v14  ;;  %v846_v13 = vmin.f32 %v2857_v58, %v2853_v22  ;;  %v4720_v14 = vld [vmem:[#allocation12_spill] sm:$0xff] }
 0x100   : >> { %4707 = vst [vmem:[#allocation81_spill] sm:$0xff] %v2837_v25  ;;  %1934 = vmatpush.msra.mxu2 %v4716_v28  ;;  %1950 = vmatpush.msra.mxu3 %v4717_v12 }
 0x101   : >> { %4708 = vst [vmem:[#allocation82_spill] sm:$0xff] %v2841_v57  ;;  %1306 = vmatpush.msra.mxu0 %v4714_v10  ;;  %1371 = vmatpush.msra.mxu1 %v4715_v26  ;;  %v4721_v10 = vld [vmem:[#allocation28_spill] sm:$0xff]  ;;  %v4722_v26 = vld [vmem:[#allocation11_spill] sm:$0xff] }
 0x102   : >> { %4709 = vst [vmem:[#allocation83_spill] sm:$0xff] %v2845_v7  ;;  %1935 = vmatpush.msra.mxu2 %v4718_v49  ;;  %1951 = vmatpush.msra.mxu3 %v4719_v11 }
 0x103   : >> { %1307 = vmatpush.msra.mxu0 %v4716_v28  ;;  %1372 = vmatpush.msra.mxu1 %v4717_v12  ;;  %v4724_v28 = vld [vmem:[#allocation10_spill] sm:$0xff]  ;;  %v4726_v12 = vld [vmem:[#allocation9_spill] sm:$0xff] }
 0x104   : >> { %871 = vmin.xlane.f32.xlu2 %v870_v27  ;;  %1936 = vmatpush.msra.mxu2 %v4720_v14  ;;  %v4725_v27 = vld [vmem:[#allocation26_spill] sm:$0xff] }
 0x105   : >> { %1952 = vmatpush.msra.mxu3 %v4721_v10  ;;  %1308 = vmatpush.msra.mxu0 %v4718_v49 }
 0x106   : >> { %1937 = vmatpush.msra.mxu2 %v4722_v26  ;;  %1373 = vmatpush.msra.mxu1 %v4719_v11  ;;  %v4729_v11 = vld [vmem:[#allocation24_spill] sm:$0xff] }
 0x107   : >> { %874 = vmin.xlane.f32.xlu1 %v873_v15  ;;  %847 = vmin.xlane.f32.xlu0 %v846_v13  ;;  %v4727_v15 = vld [vmem:[#allocation25_spill] sm:$0xff]  ;;  %v4728_v13 = vld [vmem:[#allocation8_spill] sm:$0xff] }
 0x108   : >> { %1953 = vmatpush.msra.mxu3 %v4723_v30  ;;  %1938 = vmatpush.msra.mxu2 %v4724_v28 }
 0x109   : >> { %1309 = vmatpush.msra.mxu0 %v4720_v14  ;;  %1374 = vmatpush.msra.mxu1 %v4721_v10  ;;  %v876_v10 = vmin.f32 %v2777_v17, %v2773_v24 }
 0x10a   : >> { %1954 = vmatpush.msra.mxu3 %v4725_v27  ;;  %1939 = vmatpush.msra.mxu2 %v4726_v12 }
 0x10b   : >> { %1310 = vmatpush.msra.mxu0 %v4722_v26  ;;  %1375 = vmatpush.msra.mxu1 %v4723_v30 }
 0x10c   : >> { %850 = vmin.xlane.f32.xlu2 %v849_v29  ;;  %1955 = vmatpush.msra.mxu3 %v4727_v15  ;;  %v852_v29 = vmin.f32 %v2841_v57, %v2837_v25 }
 0x10d   : >> { %1940 = vmatpush.msra.mxu2 %v4728_v13  ;;  %1311 = vmatpush.msra.mxu0 %v4724_v28 }
 0x10e   : >> { %1956 = vmatpush.msra.mxu3 %v4729_v11  ;;  %1376 = vmatpush.msra.mxu1 %v4725_v27 }
 0x10f   : >> { %1312 = vmatpush.msra.mxu0 %v4726_v12  ;;  %877 = vmin.xlane.f32.xlu0 %v876_v10 }
 0x110   : >> { %1377 = vmatpush.msra.mxu1 %v4727_v15 }
 0x111   : >> { %1313 = vmatpush.msra.mxu0 %v4728_v13 }
 0x112   : >> { %1378 = vmatpush.msra.mxu1 %v4729_v11 }
 0x114   : >> { %853 = vmin.xlane.f32.xlu2 %v852_v29 }
 0x15e   : >> { %v860_v14 = vpop.xlane.xlu0 %859  ;;  %v863_v26 = vpop.xlane.xlu1 %862 }
 0x15f   : >> { %vm898_vm1 = vcmp.le.f32.partialorder %v2825_v1, %v860_v14  ;;  %vm899_vm2 = vcmp.le.f32.partialorder %v2821_v63, %v860_v14  ;;  %vm900_vm3 = vcmp.le.f32.partialorder %v2817_v54, %v863_v26  ;;  %vm901_vm4 = vcmp.le.f32.partialorder %v2813_v56, %v863_v26 }
 0x160   : >> { %v930_v11 = vsel %vm898_vm1, %v4670_v62, 256  ;;  %v931_v12 = vsel %vm899_vm2, %v4671_v34, 256  ;;  %v932_v29 = vsel %vm900_vm3, %v4670_v62, 256  ;;  %v933_v13 = vsel %vm901_vm4, %v4671_v34, 256 }
 0x161   : >> { %vm1074_vm5 = vcmp.lt.s32.totalorder %v930_v11, %v931_v12  ;;  %vm1090_vm6 = vcmp.lt.s32.totalorder %v932_v29, %v933_v13 }
 0x162   : >> { %v3785_v10 = vsel %vm1090_vm6, %v932_v29, %v933_v13  ;;  %v3787_v15 = vsel %vm1074_vm5, %v930_v11, %v931_v12 }
 0x163   : >> { %v1093_v14 = vshra.s32 %v3785_v10, 16  ;;  %v1077_v28 = vshra.s32 %v3787_v15, 16 }
 0x165   : >> { %v3795_v31 = vcvt.s32.f32 %v1093_v14  ;;  %v3797_v49 = vcvt.s32.f32 %v1077_v28 }
 0x166   : >> { %v866_v27 = vpop.xlane.xlu2 %865 }
 0x167   : >> { %vm902_vm7 = vcmp.le.f32.partialorder %v2809_v19, %v866_v27  ;;  %vm903_vm8 = vcmp.le.f32.partialorder %v2805_v32, %v866_v27  ;;  %1096 = vmin.xlane.f32.xlu2 %v3795_v31  ;;  %1080 = vmin.xlane.f32.xlu1 %v3797_v49 }
 0x168   : >> { %v934_v26 = vsel %vm902_vm7, %v4670_v62, 256  ;;  %v935_v30 = vsel %vm903_vm8, %v4671_v34, 256  ;;  %v836_v13 = vpop.xlane.xlu0 %835 }
 0x169   : >> { %vm1106_vm9 = vcmp.lt.s32.totalorder %v934_v26, %v935_v30  ;;  %vm882_vm10 = vcmp.le.f32.partialorder %v2889_v40, %v836_v13  ;;  %vm883_vm11 = vcmp.le.f32.partialorder %v2885_v47, %v836_v13 }
 0x16a   : >> { %v839_v11 = vpop.xlane.xlu1 %838  ;;  %v914_v12 = vsel %vm882_vm10, %v4670_v62, 256  ;;  %v915_v27 = vsel %vm883_vm11, %v4671_v34, 256  ;;  %v3809_v14 = vsel %vm1106_vm9, %v934_v26, %v935_v30 }
 0x16b   : >> { %vm884_vm12 = vcmp.le.f32.partialorder %v2881_v18, %v839_v11  ;;  %vm885_vm13 = vcmp.le.f32.partialorder %v2877_v38, %v839_v11  ;;  %vm946_vm14 = vcmp.lt.s32.totalorder %v914_v12, %v915_v27  ;;  %v1109_v13 = vshra.s32 %v3809_v14, 16 }
 0x16c   : >> { %v916_v28 = vsel %vm884_vm12, %v4670_v62, 256  ;;  %v917_v29 = vsel %vm885_vm13, %v4671_v34, 256  ;;  %v3812_v50 = vsel %vm946_vm14, %v914_v12, %v915_v27 }
 0x16d   : >> { %vm962_vm15 = vcmp.lt.s32.totalorder %v916_v28, %v917_v29  ;;  %v949_v11 = vshra.s32 %v3812_v50, 16  ;;  %v3817_v41 = vcvt.s32.f32 %v1109_v13 }
 0x16e   : >> { %v842_v45 = vpop.xlane.xlu2 %841  ;;  %v3821_v23 = vsel %vm962_vm15, %v916_v28, %v917_v29 }
 0x16f   : >> { %vm886_vm0 = vcmp.le.f32.partialorder %v2873_v21, %v842_v45  ;;  %vm887_vm1 = vcmp.le.f32.partialorder %v2869_v16, %v842_v45  ;;  %v3823_v30 = vcvt.s32.f32 %v949_v11  ;;  %1112 = vmin.xlane.f32.xlu2 %v3817_v41  ;;  %v965_v45 = vshra.s32 %v3821_v23, 16  ;;  %880 = vmin.xlane.f32.xlu1 %v879_v4 }
 0x170   : >> { %v918_v26 = vsel %vm886_vm0, %v4670_v62, 256  ;;  %v919_v12 = vsel %vm887_vm1, %v4671_v34, 256 }
 0x171   : >> { %vm978_vm2 = vcmp.lt.s32.totalorder %v918_v26, %v919_v12  ;;  %952 = vmin.xlane.f32.xlu0 %v3823_v30  ;;  %v3846_v4 = vcvt.s32.f32 %v965_v45 }
 0x172   : >> { %v845_v27 = vpop.xlane.xlu1 %844  ;;  %v869_v9 = vpop.xlane.xlu0 %868  ;;  %v3844_v44 = vsel %vm978_vm2, %v918_v26, %v919_v12 }
 0x173   : >> { %vm888_vm3 = vcmp.le.f32.partialorder %v2865_v48, %v845_v27  ;;  %vm889_vm4 = vcmp.le.f32.partialorder %v2861_v37, %v845_v27  ;;  %vm904_vm5 = vcmp.le.f32.partialorder %v2801_v20, %v869_v9  ;;  %vm905_vm6 = vcmp.le.f32.partialorder %v2797_v46, %v869_v9 }
 0x174   : >> { %v920_v28 = vsel %vm888_vm3, %v4670_v62, 256  ;;  %v921_v29 = vsel %vm889_vm4, %v4671_v34, 256  ;;  %v936_v13 = vsel %vm904_vm5, %v4670_v62, 256  ;;  %v937_v11 = vsel %vm905_vm6, %v4671_v34, 256 }
 0x175   : >> { %vm994_vm7 = vcmp.lt.s32.totalorder %v920_v28, %v921_v29  ;;  %vm1122_vm8 = vcmp.lt.s32.totalorder %v936_v13, %v937_v11  ;;  %v981_v2 = vshra.s32 %v3844_v44, 16 }
 0x176   : >> { %v3838_v27 = vsel %vm994_vm7, %v920_v28, %v921_v29  ;;  %v3850_v9 = vsel %vm1122_vm8, %v936_v13, %v937_v11 }
 0x177   : >> { %v997_v8 = vshra.s32 %v3838_v27, 16  ;;  %v872_v39 = vpop.xlane.xlu2 %871  ;;  %968 = vmin.xlane.f32.xlu1 %v3846_v4  ;;  %v3871_v11 = vcvt.s32.f32 %v981_v2 }
 0x178   : >> { %vm906_vm9 = vcmp.le.f32.partialorder %v2793_v51, %v872_v39  ;;  %vm907_vm10 = vcmp.le.f32.partialorder %v2789_v43, %v872_v39 }
 0x179   : >> { %v3852_v3 = vcvt.s32.f32 %v997_v8  ;;  %v938_v61 = vsel %vm906_vm9, %v4670_v62, 256  ;;  %v939_v35 = vsel %vm907_vm10, %v4671_v34, 256  ;;  %856 = vmin.xlane.f32.xlu0 %v855_v5  ;;  %v1125_v8 = vshra.s32 %v3850_v9, 16 }
 0x17a   : >> { %v875_v28 = vpop.xlane.xlu1 %874  ;;  %v848_v29 = vpop.xlane.xlu0 %847  ;;  %vm1138_vm0 = vcmp.lt.s32.totalorder %v938_v61, %v939_v35 }
 0x17b   : >> { %vm908_vm11 = vcmp.le.f32.partialorder %v2785_v36, %v875_v28  ;;  %vm909_vm12 = vcmp.le.f32.partialorder %v2781_v6, %v875_v28  ;;  %1000 = vmin.xlane.f32.xlu2 %v3852_v3  ;;  %vm890_vm13 = vcmp.le.f32.partialorder %v2857_v58, %v848_v29  ;;  %vm891_vm14 = vcmp.le.f32.partialorder %v2853_v22, %v848_v29 }
 0x17c   : >> { %v940_v39 = vsel %vm908_vm11, %v4670_v62, 256  ;;  %v941_v26 = vsel %vm909_vm12, %v4671_v34, 256  ;;  %v922_v12 = vsel %vm890_vm13, %v4670_v62, 256  ;;  %v923_v45 = vsel %vm891_vm14, %v4671_v34, 256 }
 0x17d   : >> { %vm1154_vm15 = vcmp.lt.s32.totalorder %v940_v39, %v941_v26  ;;  %vm1010_vm1 = vcmp.lt.s32.totalorder %v922_v12, %v923_v45  ;;  %v3873_v42 = vcvt.s32.f32 %v1125_v8  ;;  %v3877_v29 = vsel %vm1138_vm0, %v938_v61, %v939_v35 }
 0x17e   : >> { %v3868_v5 = vsel %vm1154_vm15, %v940_v39, %v941_v26  ;;  %v3881_v52 = vsel %vm1010_vm1, %v922_v12, %v923_v45  ;;  %v1141_v8 = vshra.s32 %v3877_v29, 16 }
 0x17f   : >> { %v1157_v13 = vshra.s32 %v3868_v5, 16  ;;  %v851_v28 = vpop.xlane.xlu2 %850  ;;  %1128 = vmin.xlane.f32.xlu1 %v3873_v42  ;;  %v1013_v26 = vshra.s32 %v3881_v52, 16 }
 0x180   : >> { %vm892_vm2 = vcmp.le.f32.partialorder %v2849_v55, %v851_v28  ;;  %vm893_vm3 = vcmp.le.f32.partialorder %v2845_v7, %v851_v28  ;;  %v3890_v61 = vcvt.s32.f32 %v1141_v8  ;;  %v1092_v8 = vand.u32 65535, %v3785_v10 }
 0x181   : >> { %v3879_v0 = vcvt.s32.f32 %v1157_v13  ;;  %984 = vmin.xlane.f32.xlu0 %v3871_v11  ;;  %v924_v2 = vsel %vm892_vm2, %v4670_v62, 256  ;;  %v925_v39 = vsel %vm893_vm3, %v4671_v34, 256  ;;  %v3892_v35 = vcvt.s32.f32 %v1013_v26 }
 0x182   : >> { %vm1026_vm4 = vcmp.lt.s32.totalorder %v924_v2, %v925_v39  ;;  %v878_v6 = vpop.xlane.xlu0 %877  ;;  %v1076_v26 = vand.u32 65535, %v3787_v15  ;;  %v1094_v7 = vcvt.s32.f32 %v1092_v8  ;;  %v948_v8 = vand.u32 65535, %v3812_v50 }
 0x183   : >> { %1160 = vmin.xlane.f32.xlu2 %v3879_v0  ;;  %v3894_v12 = vsel %vm1026_vm4, %v924_v2, %v925_v39  ;;  %vm910_vm5 = vcmp.le.f32.partialorder %v2777_v17, %v878_v6  ;;  %vm911_vm6 = vcmp.le.f32.partialorder %v2773_v24, %v878_v6 }
 0x184   : >> { %v1029_v45 = vshra.s32 %v3894_v12, 16  ;;  %v942_v2 = vsel %vm910_vm5, %v4670_v62, 256  ;;  %v943_v39 = vsel %vm911_vm6, %v4671_v34, 256  ;;  %v1078_v17 = vcvt.s32.f32 %v1076_v26 }
 0x185   : >> { %vm1170_vm9 = vcmp.lt.s32.totalorder %v942_v2, %v943_v39 }
 0x186   : >> { %v3899_v13 = vcvt.s32.f32 %v1029_v45 }
 0x187   : >> { %1016 = vmin.xlane.f32.xlu1 %v3892_v35  ;;  %v854_v28 = vpop.xlane.xlu2 %853 }
 0x188   : >> { %vm894_vm7 = vcmp.le.f32.partialorder %v2841_v57, %v854_v28  ;;  %vm895_vm8 = vcmp.le.f32.partialorder %v2837_v25, %v854_v28  ;;  %v3920_v28 = vsel %vm1170_vm9, %v942_v2, %v943_v39  ;;  %v964_v39 = vand.u32 65535, %v3821_v23 }
 0x189   : >> { %1144 = vmin.xlane.f32.xlu0 %v3890_v61  ;;  %v926_v15 = vsel %vm894_vm7, %v4670_v62, 256  ;;  %v927_v10 = vsel %vm895_vm8, %v4671_v34, 256  ;;  %v1173_v26 = vshra.s32 %v3920_v28, 16 }
 0x18a   : >> { %vm1042_vm12 = vcmp.lt.s32.totalorder %v926_v15, %v927_v10 }
 0x18f   : >> { %1032 = vmin.xlane.f32.xlu1 %v3899_v13 }
 0x1da   : >> { %v3910_v45 = vpop.xlane.xlu2 %1096  ;;  %v3912_v36 = vpop.xlane.xlu1 %1080 }
 0x1db   : >> { %vm1098_vm10 = vcmp.eq.f32.partialorder %v3795_v31, %v3910_v45  ;;  %vm1082_vm11 = vcmp.eq.f32.partialorder %v3797_v49, %v3912_v36  ;;  %v950_v31 = vcvt.s32.f32 %v948_v8 }
 0x1dc   : >> { %v1099_v6 = vsel %vm1098_vm10, %v1094_v7, inf  ;;  %v1083_v57 = vsel %vm1082_vm11, %v1078_v17, inf  ;;  %v3928_v7 = vsel %vm1042_vm12, %v926_v15, %v927_v10  ;;  %v3932_v17 = vcvt.s32.f32 %v1173_v26 }
 0x1dd   : >> { %1100 = vmin.xlane.f32.xlu1 %v1099_v6  ;;  %1084 = vmin.xlane.f32.xlu0 %v1083_v57 }
 0x1e2   : >> { %v881_v24 = vpop.xlane.xlu1 %880  ;;  %v3944_v10 = vpop.xlane.xlu2 %1112 }
 0x1e3   : >> { %vm912_vm14 = vcmp.le.f32.partialorder %v2769_v59, %v881_v24  ;;  %vm913_vm15 = vcmp.le.f32.partialorder %v2765_v53, %v881_v24  ;;  %vm1114_vm5 = vcmp.eq.f32.partialorder %v3817_v41, %v3944_v10  ;;  %v1140_v41 = vand.u32 65535, %v3877_v29 }
 0x1e4   : >> { %v3924_v25 = vpop.xlane.xlu0 %952  ;;  %v944_v50 = vsel %vm912_vm14, %v4670_v62, 256  ;;  %v945_v49 = vsel %vm913_vm15, %v4671_v34, 256 }
 0x1e5   : >> { %vm954_vm13 = vcmp.eq.f32.partialorder %v3823_v30, %v3924_v25  ;;  %vm1186_vm0 = vcmp.lt.s32.totalorder %v944_v50, %v945_v49  ;;  %1176 = vmin.xlane.f32.xlu0 %v3932_v17  ;;  %v1045_v30 = vshra.s32 %v3928_v7, 16 }
 0x1e6   : >> { %v955_v57 = vsel %vm954_vm13, %v950_v31, inf  ;;  %v3937_v2 = vsel %vm1186_vm0, %v944_v50, %v945_v49  ;;  %v966_v31 = vcvt.s32.f32 %v964_v39  ;;  %v1108_v49 = vand.u32 65535, %v3809_v14 }
 0x1e7   : >> { %956 = vmin.xlane.f32.xlu2 %v955_v57  ;;  %v1189_v6 = vshra.s32 %v3937_v2, 16  ;;  %v3950_v26 = vcvt.s32.f32 %v1045_v30  ;;  %v980_v30 = vand.u32 65535, %v3844_v44 }
 0x1e9   : >> { %v3942_v15 = vcvt.s32.f32 %v1189_v6 }
 0x1ea   : >> { %v3948_v8 = vpop.xlane.xlu1 %968 }
 0x1eb   : >> { %1192 = vmin.xlane.f32.xlu1 %v3942_v15  ;;  %vm970_vm3 = vcmp.eq.f32.partialorder %v3846_v4, %v3948_v8  ;;  %v982_v4 = vcvt.s32.f32 %v980_v30 }
 0x1ec   : >> { %v857_v24 = vpop.xlane.xlu0 %856  ;;  %v971_v50 = vsel %vm970_vm3, %v966_v31, inf }
 0x1ed   : >> { %vm896_vm1 = vcmp.le.f32.partialorder %v2833_v33, %v857_v24  ;;  %vm897_vm2 = vcmp.le.f32.partialorder %v2829_v60, %v857_v24  ;;  %972 = vmin.xlane.f32.xlu0 %v971_v50  ;;  %v1110_v60 = vcvt.s32.f32 %v1108_v49 }
 0x1ee   : >> { %v928_v57 = vsel %vm896_vm1, %v4670_v62, 256  ;;  %v929_v23 = vsel %vm897_vm2, %v4671_v34, 256  ;;  %v3973_v31 = vpop.xlane.xlu2 %1000 }
 0x1ef   : >> { %vm1058_vm4 = vcmp.lt.s32.totalorder %v928_v57, %v929_v23  ;;  %1048 = vmin.xlane.f32.xlu2 %v3950_v26  ;;  %v1115_v14 = vsel %vm1114_vm5, %v1110_v60, inf  ;;  %vm1002_vm8 = vcmp.eq.f32.partialorder %v3852_v3, %v3973_v31  ;;  %v1028_v3 = vand.u32 65535, %v3894_v12 }
 0x1f0   : >> { %v3960_v6 = vsel %vm1058_vm4, %v928_v57, %v929_v23  ;;  %v1124_v57 = vand.u32 65535, %v3850_v9  ;;  %v996_v23 = vand.u32 65535, %v3838_v27  ;;  %v1103_v12 = vcvt.f32.s32 %v3910_v45 }
 0x1f1   : >> { %v1061_v39 = vshra.s32 %v3960_v6, 16 }
 0x1f2   : >> { %v3969_v53 = vpop.xlane.xlu1 %1128  ;;  %v1126_v60 = vcvt.s32.f32 %v1124_v57  ;;  %v998_v29 = vcvt.s32.f32 %v996_v23 }
 0x1f3   : >> { %v3967_v33 = vcvt.s32.f32 %v1061_v39  ;;  %vm1130_vm7 = vcmp.eq.f32.partialorder %v3873_v42, %v3969_v53  ;;  %v1012_v42 = vand.u32 65535, %v3881_v52 }
 0x1f4   : >> { %v3965_v24 = vpop.xlane.xlu0 %984  ;;  %v1131_v9 = vsel %vm1130_vm7, %v1126_v60, inf  ;;  %v1003_v27 = vsel %vm1002_vm8, %v998_v29, inf }
 0x1f5   : >> { %vm986_vm6 = vcmp.eq.f32.partialorder %v3871_v11, %v3965_v24  ;;  %1064 = vmin.xlane.f32.xlu0 %v3967_v33  ;;  %v1142_v11 = vcvt.s32.f32 %v1140_v41  ;;  %v1030_v41 = vcvt.s32.f32 %v1028_v3 }
 0x1f6   : >> { %v987_v44 = vsel %vm986_vm6, %v982_v4, inf  ;;  %v3990_v39 = vpop.xlane.xlu2 %1160  ;;  %v1156_v4 = vand.u32 65535, %v3868_v5 }
 0x1f7   : >> { %1116 = vmin.xlane.f32.xlu2 %v1115_v14  ;;  %988 = vmin.xlane.f32.xlu1 %v987_v44  ;;  %vm1162_vm11 = vcmp.eq.f32.partialorder %v3879_v0, %v3990_v39  ;;  %v1104_v0 = vshll.u32 %v1103_v12, 16 }
 0x1f8   : >> { %v1158_v44 = vcvt.s32.f32 %v1156_v4 }
 0x1fa   : >> { %v3985_v49 = vpop.xlane.xlu1 %1016  ;;  %v1163_v52 = vsel %vm1162_vm11, %v1158_v44, inf }
 0x1fb   : >> { %vm1018_vm10 = vcmp.eq.f32.partialorder %v3892_v35, %v3985_v49  ;;  %v1087_v35 = vcvt.f32.s32 %v3912_v36  ;;  %v2898_v36 = vmov 0.0  }
 0x1fc   : >> { %v3981_v50 = vpop.xlane.xlu0 %1144 }
 0x1fd   : >> { %vm1146_vm9 = vcmp.eq.f32.partialorder %v3890_v61, %v3981_v50  ;;  %1004 = vmin.xlane.f32.xlu0 %v1003_v27  ;;  %v1014_v61 = vcvt.s32.f32 %v1012_v42  ;;  %v1088_v29 = vshll.u32 %v1087_v35, 16  ;;  %v1172_v42 = vand.u32 65535, %v3920_v28 }
 0x1fe   : >> { %v1147_v30 = vsel %vm1146_vm9, %v1142_v11, inf }
 0x1ff   : >> { %1148 = vmin.xlane.f32.xlu1 %v1147_v30  ;;  %1132 = vmin.xlane.f32.xlu2 %v1131_v9  ;;  %v1019_v57 = vsel %vm1018_vm10, %v1014_v61, inf }
 0x202   : >> { %v3998_v14 = vpop.xlane.xlu1 %1032 }
 0x203   : >> { %vm1034_vm12 = vcmp.eq.f32.partialorder %v3899_v13, %v3998_v14  ;;  %v959_v13 = vcvt.f32.s32 %v3924_v25  ;;  %v2899_v25 = vmov 1.0  }
 0x204   : >> { %v1035_v5 = vsel %vm1034_vm12, %v1030_v41, inf }
 0x205   : >> { %1164 = vmin.xlane.f32.xlu0 %v1163_v52  ;;  %v960_v12 = vshll.u32 %v959_v13, 16 }
 0x207   : >> { %1020 = vmin.xlane.f32.xlu2 %v1019_v57  ;;  %1036 = vmin.xlane.f32.xlu1 %v1035_v5  ;;  %v1174_v5 = vcvt.s32.f32 %v1172_v42 }
 0x250   : >> { %v1101_v23 = vpop.xlane.xlu1 %1100  ;;  %v1085_v11 = vpop.xlane.xlu0 %1084 }
 0x251   : >> { %v1102_v60 = vcvt.f32.s32 %v1101_v23  ;;  %v1086_v30 = vcvt.f32.s32 %v1085_v11 }
 0x253   : >> { %v1105_v9 = vadd.s32 %v1104_v0, %v1102_v60  ;;  %v1089_v27 = vadd.s32 %v1088_v29, %v1086_v30  ;;  %v1188_v60 = vand.u32 65535, %v3937_v2  ;;  %v1044_v29 = vand.u32 65535, %v3928_v7 }
 0x254   : >> { %v975_v30 = vcvt.f32.s32 %v3948_v8 }
 0x255   : >> { %vm1220_vm13 = vcmp.eq.s32.totalorder %v4670_v62, %v1105_v9  ;;  %vm1221_vm14 = vcmp.eq.s32.totalorder %v4671_v34, %v1105_v9  ;;  %vm1218_vm15 = vcmp.eq.s32.totalorder %v4670_v62, %v1089_v27  ;;  %vm1219_vm0 = vcmp.eq.s32.totalorder %v4671_v34, %v1089_v27 }
 0x256   : >> { %v1869_v45 = vsel %vm1220_vm13, 1.0, %v2898_v36  ;;  %v1870_v4 = vsel %vm1221_vm14, 1.0, %v2898_v36  ;;  %v1867_v28 = vsel %vm1218_vm15, 1.0, %v2898_v36  ;;  %1891 = vmatmul.msk.f32.vlgmr.msra.gmra.mxu2 %vm1218_vm15, %v2899_v25  ;;  %v1868_v3 = vsel %vm1219_vm0, 1.0, %v2898_v36  ;;  %1907 = vmatmul.msk.f32.vlgmr.msra.gmra.mxu3 %vm1219_vm0, %v2899_v25 }
 0x257   : >> { %v1494_v61 = vmul.f32 1e+30, %v1869_v45  ;;  %v1495_v44 = vmul.f32 1e+30, %v1870_v4  ;;  %v1492_v41 = vmul.f32 1e+30, %v1867_v28  ;;  %v1190_v8 = vcvt.s32.f32 %v1188_v60 }
 0x258   : >> { %v1493_v57 = vmul.f32 1e+30, %v1868_v3  ;;  %v4020_v23 = vpop.xlane.xlu0 %1176  ;;  %v1046_v28 = vcvt.s32.f32 %v1044_v29  ;;  %v976_v3 = vshll.u32 %v975_v30, 16 }
 0x259   : >> { %v4023_v54 = vadd.f32 %v2817_v54, %v1494_v61   ;;  %v4026_v56 = vadd.f32 %v2813_v56, %v1495_v44   ;;  %v4029_v1 = vadd.f32 %v2825_v1, %v1492_v41   ;;  %vm1178_vm1 = vcmp.eq.f32.partialorder %v3932_v17, %v4020_v23 }
 0x25a   : >> { %v957_v52 = vpop.xlane.xlu2 %956  ;;  %v4032_v63 = vadd.f32 %v2821_v63, %v1493_v57   ;;  %v1179_v11 = vsel %vm1178_vm1, %v1174_v5, inf  ;;  %v1119_v44 = vcvt.f32.s32 %v3944_v10  ;;  %v1060_v57 = vand.u32 65535, %v3960_v6 }
 0x25b   : >> { %v958_v35 = vcvt.f32.s32 %v957_v52  ;;  %1180 = vmin.xlane.f32.xlu2 %v1179_v11  ;;  %v1007_v10 = vcvt.f32.s32 %v3973_v31 }
 0x25c   : >> { %v1062_v30 = vcvt.s32.f32 %v1060_v57 }
 0x25d   : >> { %v961_v0 = vadd.s32 %v960_v12, %v958_v35 }
 0x25e   : >> { %1892 = vmatmul.msk.f32.gmra.mxu2 %vm1220_vm13, %v2899_v25  ;;  %1908 = vmatmul.msk.f32.gmra.mxu3 %vm1221_vm14, %v2899_v25  ;;  %v4051_v7 = vpop.xlane.xlu1 %1192 }
 0x25f   : >> { %vm1202_vm2 = vcmp.eq.s32.totalorder %v4670_v62, %v961_v0  ;;  %vm1203_vm3 = vcmp.eq.s32.totalorder %v4671_v34, %v961_v0  ;;  %vm1194_vm4 = vcmp.eq.f32.partialorder %v3942_v15, %v4051_v7  ;;  %v991_v15 = vcvt.f32.s32 %v3965_v24 }
 0x260   : >> { %v1851_v27 = vsel %vm1202_vm2, 1.0, %v2898_v36  ;;  %1883 = vmatmul.msk.f32.vlgmr.msra.gmra.mxu0 %vm1202_vm2, %v2899_v25  ;;  %v1852_v42 = vsel %vm1203_vm3, 1.0, %v2898_v36  ;;  %1899 = vmatmul.msk.f32.vlgmr.msra.gmra.mxu1 %vm1203_vm3, %v2899_v25  ;;  %v973_v45 = vpop.xlane.xlu0 %972  ;;  %v1195_v4 = vsel %vm1194_vm4, %v1190_v8, inf  ;;  %v1151_v8 = vcvt.f32.s32 %v3981_v50 }
 0x261   : >> { %v1476_v17 = vmul.f32 1e+30, %v1851_v27  ;;  %v1477_v2 = vmul.f32 1e+30, %v1852_v42  ;;  %v974_v9 = vcvt.f32.s32 %v973_v45  ;;  %1196 = vmin.xlane.f32.xlu1 %v1195_v4  ;;  %v992_v6 = vshll.u32 %v991_v15, 16 }
 0x262   : >> { %v4053_v13 = vpop.xlane.xlu2 %1048  ;;  %v1167_v50 = vcvt.f32.s32 %v3990_v39 }
 0x263   : >> { %v4058_v40 = vadd.f32 %v2889_v40, %v1476_v17   ;;  %v4061_v47 = vadd.f32 %v2885_v47, %v1477_v2   ;;  %vm1050_vm5 = vcmp.eq.f32.partialorder %v3950_v26, %v4053_v13  ;;  %v977_v41 = vadd.s32 %v976_v3, %v974_v9 }
 0x264   : >> { %v1051_v61 = vsel %vm1050_vm5, %v1046_v28, inf  ;;  %v1120_v26 = vshll.u32 %v1119_v44, 16  ;;  %v1008_v17 = vshll.u32 %v1007_v10, 16  ;;  %v1135_v2 = vcvt.f32.s32 %v3969_v53 }
 0x265   : >> { %1052 = vmin.xlane.f32.xlu0 %v1051_v61  ;;  %vm1204_vm6 = vcmp.eq.s32.totalorder %v4670_v62, %v977_v41  ;;  %vm1205_vm7 = vcmp.eq.s32.totalorder %v4671_v34, %v977_v41  ;;  %v1023_v44 = vcvt.f32.s32 %v3985_v49  ;;  %v1039_v41 = vcvt.f32.s32 %v3998_v14 }
 0x266   : >> { %v1853_v52 = vsel %vm1204_vm6, 1.0, %v2898_v36  ;;  %v1854_v5 = vsel %vm1205_vm7, 1.0, %v2898_v36  ;;  %v1136_v61 = vshll.u32 %v1135_v2, 16 }
 0x267   : >> { %v1478_v12 = vmul.f32 1e+30, %v1853_v52  ;;  %v1479_v35 = vmul.f32 1e+30, %v1854_v5 }
 0x268   : >> { %1884 = vmatmul.msk.f32.gmra.mxu0 %vm1204_vm6, %v2899_v25  ;;  %1900 = vmatmul.msk.f32.gmra.mxu1 %vm1205_vm7, %v2899_v25  ;;  %v4075_v60 = vpop.xlane.xlu0 %1064 }
 0x269   : >> { %v4078_v18 = vadd.f32 %v2881_v18, %v1478_v12   ;;  %v4081_v38 = vadd.f32 %v2877_v38, %v1479_v35   ;;  %vm1066_vm8 = vcmp.eq.f32.partialorder %v3967_v33, %v4075_v60  ;;  %v1168_v12 = vshll.u32 %v1167_v50, 16 }
 0x26a   : >> { %v1117_v24 = vpop.xlane.xlu2 %1116  ;;  %v989_v0 = vpop.xlane.xlu1 %988  ;;  %v1067_v42 = vsel %vm1066_vm8, %v1062_v30, inf }
 0x26b   : >> { %v1118_v11 = vcvt.f32.s32 %v1117_v24  ;;  %v990_v29 = vcvt.f32.s32 %v989_v0  ;;  %1068 = vmin.xlane.f32.xlu2 %v1067_v42  ;;  %v1024_v0 = vshll.u32 %v1023_v44, 16 }
 0x26d   : >> { %v1121_v31 = vadd.s32 %v1120_v26, %v1118_v11  ;;  %v993_v27 = vadd.s32 %v992_v6, %v990_v29  ;;  %v1152_v26 = vshll.u32 %v1151_v8, 16  ;;  %v1040_v6 = vshll.u32 %v1039_v41, 16 }
 0x26f   : >> { %vm1206_vm9 = vcmp.eq.s32.totalorder %v4670_v62, %v993_v27  ;;  %vm1222_vm10 = vcmp.eq.s32.totalorder %v4670_v62, %v1121_v31  ;;  %vm1207_vm11 = vcmp.eq.s32.totalorder %v4671_v34, %v993_v27  ;;  %vm1223_vm12 = vcmp.eq.s32.totalorder %v4671_v34, %v1121_v31 }
 0x270   : >> { %v1855_v45 = vsel %vm1206_vm9, 1.0, %v2898_v36  ;;  %v1871_v33 = vsel %vm1222_vm10, 1.0, %v2898_v36  ;;  %1893 = vmatmul.msk.f32.gmra.mxu2 %vm1222_vm10, %v2899_v25  ;;  %v1856_v4 = vsel %vm1207_vm11, 1.0, %v2898_v36  ;;  %v1872_v53 = vsel %vm1223_vm12, 1.0, %v2898_v36  ;;  %1909 = vmatmul.msk.f32.gmra.mxu3 %vm1223_vm12, %v2899_v25  ;;  %v1005_v39 = vpop.xlane.xlu0 %1004 }
 0x271   : >> { %1885 = vmatmul.msk.f32.gmra.mxu0 %vm1206_vm9, %v2899_v25  ;;  %v1480_v28 = vmul.f32 1e+30, %v1855_v45  ;;  %v1496_v3 = vmul.f32 1e+30, %v1871_v33  ;;  %1901 = vmatmul.msk.f32.gmra.mxu1 %vm1207_vm11, %v2899_v25  ;;  %v1481_v9 = vmul.f32 1e+30, %v1856_v4  ;;  %v1006_v49 = vcvt.f32.s32 %v1005_v39 }
 0x272   : >> { %v1497_v15 = vmul.f32 1e+30, %v1872_v53  ;;  %v1133_v57 = vpop.xlane.xlu2 %1132  ;;  %v1149_v52 = vpop.xlane.xlu1 %1148 }
 0x273   : >> { %v4103_v21 = vadd.f32 %v2873_v21, %v1480_v28   ;;  %v4106_v19 = vadd.f32 %v2809_v19, %v1496_v3   ;;  %v4109_v16 = vadd.f32 %v2869_v16, %v1481_v9   ;;  %v1134_v5 = vcvt.f32.s32 %v1133_v57 }
 0x274   : >> { %v4112_v32 = vadd.f32 %v2805_v32, %v1497_v15   ;;  %v1150_v14 = vcvt.f32.s32 %v1149_v52  ;;  %v1009_v35 = vadd.s32 %v1008_v17, %v1006_v49 }
 0x275   : >> { %v1137_v10 = vadd.s32 %v1136_v61, %v1134_v5 }
 0x276   : >> { %v1153_v24 = vadd.s32 %v1152_v26, %v1150_v14  ;;  %vm1208_vm15 = vcmp.eq.s32.totalorder %v4670_v62, %v1009_v35  ;;  %vm1209_vm0 = vcmp.eq.s32.totalorder %v4671_v34, %v1009_v35 }
 0x277   : >> { %vm1224_vm13 = vcmp.eq.s32.totalorder %v4670_v62, %v1137_v10  ;;  %vm1225_vm14 = vcmp.eq.s32.totalorder %v4671_v34, %v1137_v10  ;;  %v1857_v30 = vsel %vm1208_vm15, 1.0, %v2898_v36  ;;  %v1858_v27 = vsel %vm1209_vm0, 1.0, %v2898_v36 }
 0x278   : >> { %v1873_v11 = vsel %vm1224_vm13, 1.0, %v2898_v36  ;;  %1894 = vmatmul.msk.f32.gmra.mxu2 %vm1224_vm13, %v2899_v25  ;;  %v1874_v29 = vsel %vm1225_vm14, 1.0, %v2898_v36  ;;  %1910 = vmatmul.msk.f32.gmra.mxu3 %vm1225_vm14, %v2899_v25  ;;  %v1482_v17 = vmul.f32 1e+30, %v1857_v30  ;;  %v1483_v2 = vmul.f32 1e+30, %v1858_v27  ;;  %v1165_v45 = vpop.xlane.xlu0 %1164 }
 0x279   : >> { %1886 = vmatmul.msk.f32.gmra.mxu0 %vm1208_vm15, %v2899_v25  ;;  %v1498_v31 = vmul.f32 1e+30, %v1873_v11  ;;  %1902 = vmatmul.msk.f32.gmra.mxu1 %vm1209_vm0, %v2899_v25  ;;  %v1499_v42 = vmul.f32 1e+30, %v1874_v29  ;;  %vm1226_vm1 = vcmp.eq.s32.totalorder %v4670_v62, %v1153_v24  ;;  %vm1227_vm2 = vcmp.eq.s32.totalorder %v4671_v34, %v1153_v24  ;;  %v4732_v30 = vld [vmem:[#allocation83_spill] sm:$0xff]  ;;  %v4734_v27 = vld [vmem:[#allocation77_spill] sm:$0xff] }
 0x27a   : >> { %v1021_v8 = vpop.xlane.xlu2 %1020  ;;  %v1037_v4 = vpop.xlane.xlu1 %1036  ;;  %v1875_v53 = vsel %vm1226_vm1, 1.0, %v2898_v36  ;;  %v4138_v48 = vadd.f32 %v2865_v48, %v1482_v17   ;;  %v4141_v37 = vadd.f32 %v2861_v37, %v1483_v2   ;;  %v1166_v50 = vcvt.f32.s32 %v1165_v45 }
 0x27b   : >> { %v4129_v20 = vadd.f32 %v2801_v20, %v1498_v31   ;;  %v4132_v46 = vadd.f32 %v2797_v46, %v1499_v42   ;;  %v1022_v33 = vcvt.f32.s32 %v1021_v8  ;;  %v1038_v28 = vcvt.f32.s32 %v1037_v4 }
 0x27c   : >> { %v1500_v9 = vmul.f32 1e+30, %v1875_v53  ;;  %v1876_v61 = vsel %vm1227_vm2, 1.0, %v2898_v36  ;;  %v1169_v44 = vadd.s32 %v1168_v12, %v1166_v50  ;;  %v1183_v42 = vcvt.f32.s32 %v4020_v23 }
 0x27d   : >> { %v1025_v3 = vadd.s32 %v1024_v0, %v1022_v33  ;;  %v1041_v41 = vadd.s32 %v1040_v6, %v1038_v28  ;;  %v1501_v15 = vmul.f32 1e+30, %v1876_v61  ;;  %v4730_v0 = vld [vmem:[#allocation78_spill] sm:$0xff]  ;;  %v1199_v45 = vcvt.f32.s32 %v4051_v7 }
 0x27e   : >> { %v4148_v51 = vadd.f32 %v2793_v51, %v1500_v9   ;;  %vm1228_vm6 = vcmp.eq.s32.totalorder %v4670_v62, %v1169_v44  ;;  %vm1229_vm8 = vcmp.eq.s32.totalorder %v4671_v34, %v1169_v44  ;;  %v1184_v2 = vshll.u32 %v1183_v42, 16 }
 0x27f   : >> { %vm1210_vm3 = vcmp.eq.s32.totalorder %v4670_v62, %v1025_v3  ;;  %vm1211_vm4 = vcmp.eq.s32.totalorder %v4671_v34, %v1025_v3  ;;  %v4160_v43 = vadd.f32 %v2789_v43, %v1501_v15   ;;  %vm1212_vm5 = vcmp.eq.s32.totalorder %v4670_v62, %v1041_v41 }
 0x280   : >> { %v1859_v57 = vsel %vm1210_vm3, 1.0, %v2898_v36  ;;  %1895 = vmatmul.msk.f32.gmra.mxu2 %vm1226_vm1, %v2899_v25  ;;  %v1860_v52 = vsel %vm1211_vm4, 1.0, %v2898_v36  ;;  %1911 = vmatmul.msk.f32.gmra.mxu3 %vm1227_vm2, %v2899_v25  ;;  %v1861_v26 = vsel %vm1212_vm5, 1.0, %v2898_v36  ;;  %v1877_v14 = vsel %vm1228_vm6, 1.0, %v2898_v36 }
 0x281   : >> { %1887 = vmatmul.msk.f32.gmra.mxu0 %vm1210_vm3, %v2899_v25  ;;  %v1484_v39 = vmul.f32 1e+30, %v1859_v57  ;;  %1903 = vmatmul.msk.f32.gmra.mxu1 %vm1211_vm4, %v2899_v25  ;;  %v1485_v5 = vmul.f32 1e+30, %v1860_v52  ;;  %v1486_v49 = vmul.f32 1e+30, %v1861_v26  ;;  %vm1213_vm7 = vcmp.eq.s32.totalorder %v4671_v34, %v1041_v41 }
 0x282   : >> { %v1502_v10 = vmul.f32 1e+30, %v1877_v14  ;;  %v1862_v12 = vsel %vm1213_vm7, 1.0, %v2898_v36  ;;  %v1878_v24 = vsel %vm1229_vm8, 1.0, %v2898_v36  ;;  %v1055_v4 = vcvt.f32.s32 %v4053_v13  ;;  %v4735_v13 = vld [vmem:[#allocation76_spill] sm:$0xff]  ;;  %v4736_v41 = vld [vmem:[#allocation75_spill] sm:$0xff] }
 0x283   : >> { %v4175_v58 = vadd.f32 %v2857_v58, %v1484_v39   ;;  %v4178_v22 = vadd.f32 %v2853_v22, %v1485_v5   ;;  %v4184_v55 = vadd.f32 %v2849_v55, %v1486_v49   ;;  %v1487_v35 = vmul.f32 1e+30, %v1862_v12 }
 0x284   : >> { %v4188_v6 = vadd.f32 %v4730_v0, %v1502_v10   ;;  %v1503_v29 = vmul.f32 1e+30, %v1878_v24  ;;  %v1200_v28 = vshll.u32 %v1199_v45, 16  ;;  %v1056_v61 = vshll.u32 %v1055_v4, 16 }
 0x285   : >> { %v4191_v31 = vadd.f32 %v4732_v30, %v1487_v35   ;;  %v1071_v52 = vcvt.f32.s32 %v4075_v60 }
 0x286   : >> { %4731 = vst [vmem:[#allocation84_spill] sm:$0xff] %v4188_v6  ;;  %v4194_v6 = vadd.f32 %v4734_v27, %v1503_v29   ;;  %v4737_v29 = vld [vmem:[#allocation48_spill] sm:$0xff] }
 0x287   : >> { %4733 = vst [vmem:[#allocation85_spill] sm:$0xff] %v4191_v31 }
 0x288   : >> { %1896 = vmatmul.msk.f32.gmra.mxu2 %vm1228_vm6, %v2899_v25  ;;  %1912 = vmatmul.msk.f32.gmra.mxu3 %vm1229_vm8, %v2899_v25 }
 0x289   : >> { %1888 = vmatmul.msk.f32.gmra.mxu0 %vm1212_vm5, %v2899_v25  ;;  %1904 = vmatmul.msk.f32.gmra.mxu1 %vm1213_vm7, %v2899_v25 }
 0x2ce   : >> { %v1181_v17 = vpop.xlane.xlu2 %1180 }
 0x2cf   : >> { %v1182_v8 = vcvt.f32.s32 %v1181_v17 }
 0x2d1   : >> { %v1185_v33 = vadd.s32 %v1184_v2, %v1182_v8  ;;  %v4738_v8 = vld [vmem:[#allocation40_spill] sm:$0xff] }
 0x2d3   : >> { %vm1230_vm9 = vcmp.eq.s32.totalorder %v4670_v62, %v1185_v33  ;;  %vm1231_vm10 = vcmp.eq.s32.totalorder %v4671_v34, %v1185_v33 }
 0x2d4   : >> { %v1879_v53 = vsel %vm1230_vm9, 1.0, %v2898_v36  ;;  %1897 = vmatmul.msk.f32.gmra.mxu2 %vm1230_vm9, %v2899_v25  ;;  %v1880_v50 = vsel %vm1231_vm10, 1.0, %v2898_v36  ;;  %1913 = vmatmul.msk.f32.gmra.mxu3 %vm1231_vm10, %v2899_v25  ;;  %v1197_v23 = vpop.xlane.xlu1 %1196 }
 0x2d5   : >> { %v1504_v3 = vmul.f32 1e+30, %v1879_v53  ;;  %v1505_v9 = vmul.f32 1e+30, %v1880_v50  ;;  %v1198_v7 = vcvt.f32.s32 %v1197_v23  ;;  %v1072_v53 = vshll.u32 %v1071_v52, 16  ;;  %v4739_v23 = vld [vmem:[#allocation74_spill] sm:$0xff] }
 0x2d7   : >> { %v4216_v17 = vadd.f32 %v4735_v13, %v1504_v3   ;;  %v4219_v24 = vadd.f32 %v4736_v41, %v1505_v9   ;;  %v1201_v15 = vadd.s32 %v1200_v28, %v1198_v7  ;;  %v4741_v7 = vld [vmem:[#allocation82_spill] sm:$0xff] }
 0x2d8   : >> { %v1053_v44 = vpop.xlane.xlu0 %1052 }
 0x2d9   : >> { %v1054_v57 = vcvt.f32.s32 %v1053_v44  ;;  %v1339_v5 = vpop.f32.mrf.mxu2  ;;  %v1404_v26 = vpop.f32.mrf.mxu3  ;;  %vm1232_vm11 = vcmp.eq.s32.totalorder %v4670_v62, %v1201_v15  ;;  %vm1233_vm12 = vcmp.eq.s32.totalorder %v4671_v34, %v1201_v15 }
 0x2da   : >> { %v1405_v49 = vadd.f32 %v1404_v26, %v1339_v5  ;;  %v1881_v12 = vsel %vm1232_vm11, 1.0, %v2898_v36  ;;  %v1882_v35 = vsel %vm1233_vm12, 1.0, %v2898_v36  ;;  %v4746_v5 = vld [vmem:[#allocation73_spill] sm:$0xff] }
 0x2db   : >> { %v1057_v39 = vadd.s32 %v1056_v61, %v1054_v57  ;;  %v1506_v60 = vmul.f32 1e+30, %v1881_v12  ;;  %v1507_v2 = vmul.f32 1e+30, %v1882_v35  ;;  %v4742_v61 = vld [vmem:[#allocation81_spill] sm:$0xff] }
 0x2dc   : >> { %v1436_v30 = vadd.f32 %v1405_v49, %v4737_v29  ;;  %1898 = vmatmul.msk.f32.gmra.mxu2 %vm1232_vm11, %v2899_v25  ;;  %1914 = vmatmul.msk.f32.gmra.mxu3 %vm1233_vm12, %v2899_v25  ;;  %v4748_v29 = vld [vmem:[#allocation49_spill] sm:$0xff] }
 0x2dd   : >> { %v1315_v14 = vpop.f32.mrf.mxu0  ;;  %v1380_v10 = vpop.f32.mrf.mxu1  ;;  %vm1214_vm13 = vcmp.eq.s32.totalorder %v4670_v62, %v1057_v39  ;;  %vm1215_vm14 = vcmp.eq.s32.totalorder %v4671_v34, %v1057_v39  ;;  %v4237_v59 = vadd.f32 %v2769_v59, %v1506_v60   ;;  %v4244_v28 = vadd.f32 %v4739_v23, %v1507_v2   ;;  %v4744_v39 = vld [vmem:[#allocation65_spill] sm:$0xff]  ;;  %v4752_v23 = vld [vmem:[#allocation79_spill] sm:$0xff] }
 0x2de   : >> { %v1381_v0 = vadd.f32 %v1380_v10, %v1315_v14  ;;  %v1863_v27 = vsel %vm1214_vm13, 1.0, %v2898_v36  ;;  %1889 = vmatmul.msk.f32.gmra.mxu0 %vm1214_vm13, %v2899_v25  ;;  %v1864_v42 = vsel %vm1215_vm14, 1.0, %v2898_v36  ;;  %1905 = vmatmul.msk.f32.gmra.mxu1 %vm1215_vm14, %v2899_v25  ;;  %v1452_v50 = vmax.f32 %v1436_v30, 0.0  ;;  %v1069_v3 = vpop.xlane.xlu2 %1068 }
 0x2df   : >> { %v1488_v33 = vmul.f32 1e+30, %v1863_v27  ;;  %v1489_v4 = vmul.f32 1e+30, %v1864_v42  ;;  %4740 = vst [vmem:[#allocation86_spill] sm:$0xff] %v4244_v28  ;;  %v1070_v41 = vcvt.f32.s32 %v1069_v3  ;;  %v4753_v3 = vld [vmem:[#allocation64_spill] sm:$0xff] }
 0x2e0   : >> { %v1428_v45 = vadd.f32 %v1381_v0, %v4738_v8  ;;  %v4253_v52 = vmax.f32 %v4744_v39, %v1452_v50  }
 0x2e1   : >> { %v4247_v57 = vadd.f32 %v4741_v7, %v1488_v33   ;;  %v4250_v44 = vadd.f32 %v4742_v61, %v1489_v4   ;;  %v1073_v49 = vadd.s32 %v1072_v53, %v1070_v41  ;;  %v1342_v14 = vpop.f32.mrf.mxu2  ;;  %v1407_v10 = vpop.f32.mrf.mxu3  ;;  %v4750_v4 = vld [vmem:[#allocation80_spill] sm:$0xff] }
 0x2e2   : >> { %v1444_v9 = vmax.f32 %v1428_v45, 0.0  ;;  %v4745_v26 = vmov %v4253_v52  ;;  %v1408_v12 = vadd.f32 %v1407_v10, %v1342_v14  ;;  %v4749_v45 = vld [vmem:[#allocation41_spill] sm:$0xff] }
 0x2e3   : >> { %4743 = vst [vmem:[#allocation87_spill] sm:$0xff] %v4250_v44  ;;  %vm1216_vm15 = vcmp.eq.s32.totalorder %v4670_v62, %v1073_v49  ;;  %vm1217_vm0 = vcmp.eq.s32.totalorder %v4671_v34, %v1073_v49  ;;  %v4755_v7 = vld [vmem:[#allocation72_spill] sm:$0xff]  ;;  %v4757_v44 = vld [vmem:[#allocation42_spill] sm:$0xff] }
 0x2e4   : >> { %v4256_v0 = vmax.f32 %v4746_v5, %v1444_v9   ;;  %v1437_v30 = vadd.f32 %v1408_v12, %v4748_v29  ;;  %v1865_v42 = vsel %vm1216_vm15, 1.0, %v2898_v36  ;;  %v1866_v52 = vsel %vm1217_vm0, 1.0, %v2898_v36  ;;  %1548 = vst [vmem:[%s3412_s25 + $0x40] sm:$0xff] (%p4327_p0), %v4745_v26 }
 0x2e5   : >> { %v1318_v35 = vpop.f32.mrf.mxu0  ;;  %v1383_v60 = vpop.f32.mrf.mxu1  ;;  %v1491_v2 = vmul.f32 1e+30, %v1866_v52 }
 0x2e6   : >> { %v4747_v15 = vmov %v4256_v0  ;;  %v1384_v27 = vadd.f32 %v1383_v60, %v1318_v35  ;;  %1890 = vmatmul.msk.f32.gmra.mxu0 %vm1216_vm15, %v2899_v25  ;;  %v1490_v0 = vmul.f32 1e+30, %v1865_v42  ;;  %1906 = vmatmul.msk.f32.gmra.mxu1 %vm1217_vm0, %v2899_v25  ;;  %v1453_v8 = vmax.f32 %v1437_v30, 0.0  ;;  %v4758_v35 = vld [vmem:[#allocation71_spill] sm:$0xff]  ;;  %v4760_v30 = vld [vmem:[#allocation50_spill] sm:$0xff] }
 0x2e7   : >> { %v4270_v60 = vadd.f32 %v4752_v23, %v1491_v2   ;;  %1540 = vst [vmem:[%s3412_s25] sm:$0xff] (%p4327_p0), %v4747_v15 }
 0x2e8   : >> { %v1429_v33 = vadd.f32 %v1384_v27, %v4749_v45  ;;  %v4267_v53 = vadd.f32 %v4750_v4, %v1490_v0   ;;  %v4273_v42 = vmax.f32 %v4753_v3, %v1453_v8   ;;  %v4761_v45 = vld [vmem:[#allocation43_spill] sm:$0xff] }
 0x2ea   : >> { %4751 = vst [vmem:[#allocation88_spill] sm:$0xff] %v4267_v53  ;;  %v4754_v49 = vmov %v4273_v42  ;;  %v1445_v9 = vmax.f32 %v1429_v33, 0.0  ;;  %v4762_v33 = vld [vmem:[#allocation63_spill] sm:$0xff] }
 0x2eb   : > { %1549 = vst [vmem:[%s3412_s25 + $0x48] sm:$0xff] (%p4327_p0), %v4754_v49 }
 0x2ec   : >> { %v4276_v2 = vmax.f32 %v4755_v7, %v1445_v9   ;;  %v4764_v9 = vld [vmem:[#allocation70_spill] sm:$0xff] }
 0x2ee   : >> { %v4756_v14 = vmov %v4276_v2  ;;  %v1321_v36 = vpop.f32.mrf.mxu0  ;;  %v1386_v61 = vpop.f32.mrf.mxu1 }
 0x2ef   : >> { %v1387_v25 = vadd.f32 %v1386_v61, %v1321_v36  ;;  %v4766_v36 = vld [vmem:[#allocation51_spill] sm:$0xff]  ;;  %1541 = vst [vmem:[%s3412_s25 + $0x8] sm:$0xff] (%p4327_p0), %v4756_v14 }
 0x2f1   : >> { %v1430_v41 = vadd.f32 %v1387_v25, %v4757_v44 }
 0x2f3   : >> { %v1446_v39 = vmax.f32 %v1430_v41, 0.0  ;;  %v1345_v5 = vpop.f32.mrf.mxu2  ;;  %v1410_v10 = vpop.f32.mrf.mxu3 }
 0x2f4   : >> { %v1411_v12 = vadd.f32 %v1410_v10, %v1345_v5 }
 0x2f5   : >> { %v4280_v35 = vmax.f32 %v4758_v35, %v1446_v39  }
 0x2f6   : >> { %v1438_v27 = vadd.f32 %v1411_v12, %v4760_v30  ;;  %v1324_v52 = vpop.f32.mrf.mxu0  ;;  %v1389_v42 = vpop.f32.mrf.mxu1  ;;  %v4767_v12 = vld [vmem:[#allocation44_spill] sm:$0xff]  ;;  %v4768_v30 = vld [vmem:[#allocation62_spill] sm:$0xff] }
 0x2f7   : >> { %v4759_v29 = vmov %v4280_v35  ;;  %v1390_v0 = vadd.f32 %v1389_v42, %v1324_v52 }
 0x2f8   : >> { %v1454_v8 = vmax.f32 %v1438_v27, 0.0  ;;  %1542 = vst [vmem:[%s3412_s25 + $0x10] sm:$0xff] (%p4327_p0), %v4759_v29 }
 0x2f9   : >> { %v1431_v2 = vadd.f32 %v1390_v0, %v4761_v45  ;;  %v4772_v45 = vld [vmem:[#allocation52_spill] sm:$0xff] }
 0x2fa   : >> { %v4285_v61 = vmax.f32 %v4762_v33, %v1454_v8   ;;  %v4770_v8 = vld [vmem:[#allocation69_spill] sm:$0xff] }
 0x2fb   : >> { %v1447_v4 = vmax.f32 %v1431_v2, 0.0  ;;  %v1348_v53 = vpop.f32.mrf.mxu2  ;;  %v1413_v23 = vpop.f32.mrf.mxu3 }
 0x2fc   : >> { %v4763_v34 = vmov %v4285_v61  ;;  %v1414_v3 = vadd.f32 %v1413_v23, %v1348_v53 }
 0x2fd   : >> { %v4288_v7 = vmax.f32 %v4764_v9, %v1447_v4   ;;  %1550 = vst [vmem:[%s3412_s25 + $0x50] sm:$0xff] (%p4327_p0), %v4763_v34 }
 0x2fe   : >> { %v1439_v25 = vadd.f32 %v1414_v3, %v4766_v36  ;;  %v1327_v44 = vpop.f32.mrf.mxu0  ;;  %v1392_v41 = vpop.f32.mrf.mxu1  ;;  %v4773_v3 = vld [vmem:[#allocation45_spill] sm:$0xff] }
 0x2ff   : >> { %v4765_v10 = vmov %v4288_v7  ;;  %v1393_v39 = vadd.f32 %v1392_v41, %v1327_v44  ;;  %v4774_v7 = vld [vmem:[#allocation61_spill] sm:$0xff] }
 0x300   : >> { %v1455_v5 = vmax.f32 %v1439_v25, 0.0  ;;  %1543 = vst [vmem:[%s3412_s25 + $0x18] sm:$0xff] (%p4327_p0), %v4765_v10 }
 0x301   : >> { %v1432_v35 = vadd.f32 %v1393_v39, %v4767_v12 }
 0x302   : >> { %v4293_v44 = vmax.f32 %v4768_v30, %v1455_v5  }
 0x303   : >> { %v1448_v52 = vmax.f32 %v1432_v35, 0.0  ;;  %v1351_v61 = vpop.f32.mrf.mxu2  ;;  %v1416_v42 = vpop.f32.mrf.mxu3  ;;  %v4776_v35 = vld [vmem:[#allocation68_spill] sm:$0xff] }
 0x304   : >> { %v4769_v27 = vmov %v4293_v44  ;;  %v1417_v0 = vadd.f32 %v1416_v42, %v1351_v61  ;;  %v4779_v42 = vld [vmem:[#allocation60_spill] sm:$0xff] }
 0x305   : >> { %v4296_v39 = vmax.f32 %v4770_v8, %v1448_v52   ;;  %v4778_v52 = vld [vmem:[#allocation53_spill] sm:$0xff]  ;;  %1551 = vst [vmem:[%s3412_s25 + $0x58] sm:$0xff] (%p4327_p0), %v4769_v27 }
 0x306   : >> { %v1440_v2 = vadd.f32 %v1417_v0, %v4772_v45  ;;  %v1330_v33 = vpop.f32.mrf.mxu0  ;;  %v1395_v4 = vpop.f32.mrf.mxu1 }
 0x307   : >> { %v4771_v62 = vmov %v4296_v39  ;;  %v1396_v53 = vadd.f32 %v1395_v4, %v1330_v33  ;;  %v4781_v4 = vld [vmem:[#allocation54_spill] sm:$0xff] }
 0x308   : >> { %v1456_v23 = vmax.f32 %v1440_v2, 0.0  ;;  %1544 = vst [vmem:[%s3412_s25 + $0x20] sm:$0xff] (%p4327_p0), %v4771_v62 }
 0x309   : >> { %v1433_v9 = vadd.f32 %v1396_v53, %v4773_v3 }
 0x30a   : >> { %v4301_v5 = vmax.f32 %v4774_v7, %v1456_v23   ;;  %v4782_v7 = vld [vmem:[#allocation46_spill] sm:$0xff] }
 0x30b   : >> { %v1449_v36 = vmax.f32 %v1433_v9, 0.0  ;;  %v1354_v25 = vpop.f32.mrf.mxu2  ;;  %v1419_v44 = vpop.f32.mrf.mxu3 }
 0x30c   : >> { %v4775_v12 = vmov %v4301_v5  ;;  %v1420_v41 = vadd.f32 %v1419_v44, %v1354_v25  ;;  %v4783_v44 = vld [vmem:[#allocation59_spill] sm:$0xff] }
 0x30d   : >> { %v4304_v8 = vmax.f32 %v4776_v35, %v1449_v36   ;;  %v4785_v35 = vld [vmem:[#allocation67_spill] sm:$0xff]  ;;  %1552 = vst [vmem:[%s3412_s25 + $0x60] sm:$0xff] (%p4327_p0), %v4775_v12 }
 0x30e   : >> { %v1441_v39 = vadd.f32 %v1420_v41, %v4778_v52 }
 0x30f   : >> { %v4777_v30 = vmov %v4304_v8 }
 0x310   : >> { %v1457_v61 = vmax.f32 %v1441_v39, 0.0  ;;  %1545 = vst [vmem:[%s3412_s25 + $0x28] sm:$0xff] (%p4327_p0), %v4777_v30 }
 0x312   : >> { %v4308_v9 = vmax.f32 %v4779_v42, %v1457_v61   ;;  %v4787_v42 = vld [vmem:[#allocation55_spill] sm:$0xff] }
 0x314   : >> { %v4780_v31 = vmov %v4308_v9 }
 0x315   : > { %1553 = vst [vmem:[%s3412_s25 + $0x68] sm:$0xff] (%p4327_p0), %v4780_v31 }
 0x357   : >> { %v1357_v0 = vpop.f32.mrf.mxu2  ;;  %v1422_v45 = vpop.f32.mrf.mxu3 }
 0x358   : >> { %v1423_v2 = vadd.f32 %v1422_v45, %v1357_v0 }
 0x35a   : >> { %v1442_v53 = vadd.f32 %v1423_v2, %v4781_v4 }
 0x35b   : >> { %v1333_v33 = vpop.f32.mrf.mxu0  ;;  %v1398_v5 = vpop.f32.mrf.mxu1 }
 0x35c   : >> { %v1399_v23 = vadd.f32 %v1398_v5, %v1333_v33  ;;  %v1458_v3 = vmax.f32 %v1442_v53, 0.0  ;;  %v4788_v33 = vld [vmem:[#allocation47_spill] sm:$0xff] }
 0x35d   : >> { %v4789_v53 = vld [vmem:[#allocation58_spill] sm:$0xff] }
 0x35e   : >> { %v1434_v25 = vadd.f32 %v1399_v23, %v4782_v7  ;;  %v4313_v23 = vmax.f32 %v4783_v44, %v1458_v3   ;;  %v4797_v44 = vmov %v4769_v27  ;;  %v4805_v3 = vmov %v4765_v10  ;;  %v4813_v7 = vld [vmem:[#allocation85_spill] sm:$0xff] }
 0x35f   : >> { %v1360_v36 = vpop.f32.mrf.mxu2  ;;  %v1425_v41 = vpop.f32.mrf.mxu3 }
 0x360   : >> { %v4784_v13 = vmov %v4313_v23  ;;  %v1450_v8 = vmax.f32 %v1434_v25, 0.0  ;;  %v1426_v9 = vadd.f32 %v1425_v41, %v1360_v36  ;;  %v4791_v23 = vld [vmem:[#allocation66_spill] sm:$0xff]  ;;  %v4810_v36 = vld [vmem:[#allocation84_spill] sm:$0xff]  ;;  %v4812_v25 = vld [vmem:[#allocation87_spill] sm:$0xff] }
 0x361   : > { %1554 = vst [vmem:[%s3412_s25 + $0x70] sm:$0xff] (%p4327_p0), %v4784_v13 }
 0x362   : >> { %v4316_v52 = vmax.f32 %v4785_v35, %v1450_v8   ;;  %v1443_v0 = vadd.f32 %v1426_v9, %v4787_v42  ;;  %v4795_v9 = vmov %v4780_v31  ;;  %v4799_v42 = vmov %v4754_v49 }
 0x363   : >> { %v1336_v39 = vpop.f32.mrf.mxu0  ;;  %v1401_v61 = vpop.f32.mrf.mxu1  ;;  %v4803_v8 = vmov %v4777_v30  ;;  %v4806_v35 = vmov %v4759_v29 }
 0x364   : >> { %v4786_v50 = vmov %v4316_v52  ;;  %v1402_v45 = vadd.f32 %v1401_v61, %v1336_v39  ;;  %v1459_v2 = vmax.f32 %v1443_v0, 0.0  ;;  %v4798_v61 = vmov %v4763_v34 }
 0x365   : >> { %v4800_v52 = vmov %v4745_v26  ;;  %v4802_v41 = vmov %v4786_v50  ;;  %v4804_v39 = vmov %v4771_v62  ;;  %v4808_v0 = vmov %v4747_v15  ;;  %1546 = vst [vmem:[%s3412_s25 + $0x30] sm:$0xff] (%p4327_p0), %v4786_v50 }
 0x366   : >> { %v1435_v4 = vadd.f32 %v1402_v45, %v4788_v33  ;;  %v4321_v45 = vmax.f32 %v4789_v53, %v1459_v2   ;;  %v4807_v2 = vmov %v4756_v14  ;;  %v4809_v53 = vld [vmem:[#allocation86_spill] sm:$0xff]  ;;  %v4811_v33 = vld [vmem:[#allocation88_spill] sm:$0xff] }
 0x368   : >> { %v4790_v11 = vmov %v4321_v45  ;;  %v1451_v5 = vmax.f32 %v1435_v4, 0.0  ;;  %784 = sbr.rel (!%p4327_p0) target bundleno = 233 (0xe9), region = 90 }
 0x369   : >> { %v4793_v45 = vmov %v4790_v11  ;;  %1555 = vst [vmem:[%s3412_s25 + $0x78] sm:$0xff] (%p4327_p0), %v4790_v11 }
 0x36a   : >> { %v1467_v28 = vmax.f32 %v4791_v23, %v1451_v5   ;;  %v4794_v23 = vmov %v4784_v13  ;;  %v4796_v5 = vmov %v4775_v12 }
 0x36c   : >> { %v4801_v4 = vmov %v1467_v28  ;;  %1547 = vst [vmem:[%s3412_s25 + $0x38] sm:$0xff] (%p4327_p0), %v1467_v28 }
 0x36d   : > { %2462 = shalt.err (!%p2459_p9)
}
 0x36e   : > { %s2900_s12 = smov 128   ;;  %s2901_s25 = smov 8  }
 0x36f   : > { %1961 = dma.vmem_to_hbm [thread:$0]  (%p2970_p5), %s1570_s9, 2048, %s1572_s10, %s1557_s22, %s2900_s12, %s2900_s12, %s2901_s25  }
 0x370 PF: > { %p1973_p10 = scmp.ge.s32.totalorder %s2697_s21, 2  ;;  %s1586_s26 = sand.u32 1, %s2685_s18  }
 0x371   : > { %s1587_s30 = scalar_lea.sflag [#allocation4], %s1586_s26 }
 0x372   : > { %p1968_p11 = pnand %p1973_p10, %p2974_p6 }
 0x374   : > { %p1969_p12 = pneg %p1968_p11 }
 0x376   : > { %2680 = dma.done.wait (%p1969_p12), %s1587_s30, 2048  }
 0x377   : > { %2682 = vsyncadd (%p1969_p12), %s1587_s30, 4294965248  ;;  %p16_p13 = scmp.ge.s32.totalorder %s2957_s24, 4   ;;  %s4815_s18 = smov %s2689_s19 }
 0x378   : > { %s4816_s19 = smov %s2693_s20  ;;  %s4817_s20 = smov %s2968_s27 }
 0x379   : > { %s4818_s21 = smov %s2957_s24  ;;  %18 = sbr.rel (!%p16_p13) target bundleno = 4 (0x4), region = 101 }
 0x37e   :  { %1593 = vsyncpa [#allocation3], 1 }
 0x37f   :  { %1595 = vsyncpa [#allocation3 + $0x1], 1 }
 0x380   :  { %1596 = vsyncpa [#allocation4], 1 }
 0x381   :  { %1598 = vsyncpa [#allocation4 + $0x1], 1 }

</bundles_post_ra>
